<compile_context>
chip_gen: v7x
topology: tpu7x:2x2x1
jax: 0.10.0
libtpu: 0.0.40
codegen_flags: <defaults>
</compile_context>

<pallas_src>
import functools

import jax
import jax.numpy as jnp
import numpy as np
from jax.experimental import pallas as pl
from jax.experimental.pallas import tpu as pltpu


# Tap ordering (dy, dx) for a 3x3 "same" conv; matches (ky, kx) row-major.
_OFFSETS = tuple((dy, dx) for dy in (-1, 0, 1) for dx in (-1, 0, 1))


def _build_masks(H, W):
    """(9, H*W) float32 validity masks for the 9 taps of a 3x3 'same' conv."""
    hh, ww = np.meshgrid(np.arange(H), np.arange(W), indexing="ij")
    hh = hh.reshape(-1)
    ww = ww.reshape(-1)
    masks = np.zeros((9, H * W), np.float32)
    for t, (dy, dx) in enumerate(_OFFSETS):
        valid = ((hh + dy >= 0) & (hh + dy < H) &
                 (ww + dx >= 0) & (ww + dx < W))
        masks[t] = valid.astype(np.float32)
    return jnp.asarray(masks)


def _make_fused_kernel(C, H, W, compute_dtype):
    HW = H * W

    def kernel(x_ref, masks_ref,
               w_loc, b_loc,
               w_b1, b_b1, w_b2, b_b2, w_b3, b_b3,
               w_b4, b_b4, w_b5, b_b5,
               w_dw, b_dw, w_pw,
               o_ref):
        # Hoisted: load + cast the 9 tap masks once; reused by every 3x3 layer.
        masks = [masks_ref[pl.ds(t, 1), :].astype(compute_dtype)
                 for t in range(9)]                                # each (1, HW)

        def shifts3x3(a):
            """9 shifted + zero-masked copies of a (C, HW) activation."""
            a_c = a.astype(compute_dtype)
            outs = []
            for t, (dy, dx) in enumerate(_OFFSETS):
                off = dy * W + dx
                sh = (-off) % HW                  # static, non-negative
                r = a_c if sh == 0 else pltpu.roll(a_c, sh, axis=1)
                outs.append(r * masks[t])
            return outs

        def conv3x3(a, w_ref, b_ref, relu):
            # im2col: one (C, 9C) x (9C, HW) MXU matmul instead of 9 taps.
            patches = jnp.concatenate(shifts3x3(a), axis=0)        # (9C, HW)
            y = jnp.dot(w_ref[...].astype(compute_dtype), patches,
                        preferred_element_type=jnp.float32)
            y = y + b_ref[...]
            return jnp.maximum(y, 0.0) if relu else y

        def conv1x1(a, w_ref, b_ref, relu):
            y = jnp.dot(w_ref[...].astype(compute_dtype),
                        a.astype(compute_dtype),
                        preferred_element_type=jnp.float32)
            if b_ref is not None:
                y = y + b_ref[...]
            return jnp.maximum(y, 0.0) if relu else y

        def conv_dw3x3(a, w_ref, b_ref):
            # Depthwise 3x3 as 9 per-channel VPU FMAs (no MXU waste).
            sh = shifts3x3(a)
            acc = w_ref[:, pl.ds(0, 1)] * sh[0]
            for t in range(1, 9):
                acc = acc + w_ref[:, pl.ds(t, 1)] * sh[t]
            return acc + b_ref[...]

        x = x_ref[0]                              # (C, HW), float32

        # local = local2(x) + local1(x)  (l2 folded into l1's centre tap)
        local = conv3x3(x, w_loc, b_loc, relu=False)

        # glb = Bottleneck(x)   (residuals added AFTER the ReLU)
        o = conv1x1(x, w_b1, b_b1, relu=True)
        r1 = o
        o = conv3x3(o, w_b2, b_b2, relu=True)
        r2 = o
        o = conv1x1(o, w_b3, b_b3, relu=True) + r1
        o = conv3x3(o, w_b4, b_b4, relu=True) + r2
        o = conv1x1(o, w_b5, b_b5, relu=True)

        # out = glb + local; proj = SeparableConvBN (dw 3x3 + BN, then pw 1x1)
        o = o + local
        o = conv_dw3x3(o, w_dw, b_dw)
        o = conv1x1(o, w_pw, None, relu=False)

        # out[:, :, :H, :W] in the PyTorch module is a no-op (same spatial dims).
        o_ref[0] = o.astype(o_ref.dtype)

    return kernel


_MIDDLE_ORDER = ("b1", "b2", "b3", "b4", "b5", "dw")


def global_local_forward(x_nchw, params, *, compute_dtype=jnp.float32):
    B, C, H, W = x_nchw.shape
    HW = H * W
    x2 = x_nchw.reshape(B, C, HW)        # NCHW -> (B, C, H*W): free reshape
    masks = _build_masks(H, W)

    # Fold local2 (1x1 ConvBN) into the centre tap (block 4) of local1's im2col
    # weight: "local = local2(x) + local1(x)" becomes ONE MXU matmul.
    w_loc = params["l1"]["mat"].at[:, 4 * C:5 * C].add(params["l2"]["mat"])
    b_loc = params["l1"]["bias_col"] + params["l2"]["bias_col"]

    args = [x2, masks, w_loc, b_loc]
    in_specs = [
        pl.BlockSpec((1, C, HW), lambda b: (b, 0, 0)),
        pl.BlockSpec((9, HW), lambda b: (0, 0)),
        pl.BlockSpec(w_loc.shape, lambda b: (0, 0)),
        pl.BlockSpec(b_loc.shape, lambda b: (0, 0)),
    ]
    for name in _MIDDLE_ORDER:
        w = params[name]["mat"]
        bias = params[name]["bias_col"]
        args += [w, bias]
        in_specs += [pl.BlockSpec(w.shape, lambda b: (0, 0)),
                     pl.BlockSpec(bias.shape, lambda b: (0, 0))]
    w_pw = params["pw"]["mat"]
    args.append(w_pw)
    in_specs.append(pl.BlockSpec(w_pw.shape, lambda b: (0, 0)))

    # TODO(synk): at production sizes (e.g. H=W=128, C=256) add spatial tiling
    # over H with a (k-1)-row halo in the index_map so per-step blocks respect
    # v7x's 64 MiB VMEM; per-group matmuls for b1-b5 would also pay off there.
    out = pl.pallas_call(
        _make_fused_kernel(C, H, W, compute_dtype),
        out_shape=jax.ShapeDtypeStruct((B, C, HW), x_nchw.dtype),
        grid=(B,),
        in_specs=in_specs,
        out_specs=pl.BlockSpec((1, C, HW), lambda b: (b, 0, 0)),
        compiler_params=pltpu.CompilerParams(
            dimension_semantics=("parallel",)),
    )(*args)
    return out.reshape(B, C, H, W)


# -----------------------------------------------------------------------------
# Deterministic synthetic parameters (conv weights + folded inference BN)
# -----------------------------------------------------------------------------
def init_params(key, C):
    keys = iter(jax.random.split(key, 64))
    eps = 1e-5

    def conv_w(cout, cin_per_g, k):
        return 0.1 * jax.random.normal(next(keys), (cout, cin_per_g, k, k),
                                       jnp.float32)

    def bn_fold(c):
        gamma = jax.random.uniform(next(keys), (c,), jnp.float32, 0.5, 1.5)
        beta = 0.1 * jax.random.normal(next(keys), (c,), jnp.float32)
        mean = 0.1 * jax.random.normal(next(keys), (c,), jnp.float32)
        var = jax.random.uniform(next(keys), (c,), jnp.float32, 0.5, 1.5)
        scale = gamma * jax.lax.rsqrt(var + eps)
        bias = beta - mean * scale
        return scale, bias

    def dense_oihw(w, groups):
        cout, cpg_in, kh, kw = w.shape
        cin = cpg_in * groups
        cpg_out = cout // groups
        dense = jnp.zeros((cout, cin, kh, kw), w.dtype)
        for g in range(groups):
            dense = dense.at[g * cpg_out:(g + 1) * cpg_out,
                             g * cpg_in:(g + 1) * cpg_in].set(
                                 w[g * cpg_out:(g + 1) * cpg_out])
        return dense

    def std_layer(groups, k):
        w = conv_w(C, C // groups, k)
        oihw = dense_oihw(w, groups)          # block-diagonal dense weights
        scale, bias = bn_fold(C)
        mat = jnp.transpose(oihw, (0, 2, 3, 1)).reshape(C, k * k * C)
        mat = scale[:, None] * mat            # fold BN scale into the weights
        return {"mat": mat, "bias_col": bias.reshape(C, 1),
                "oihw": oihw, "scale": scale, "bias": bias}

    p = {}
    p["l1"] = std_layer(1, 3)                 # ConvBN(dim, dim, 3)
    p["l2"] = std_layer(1, 1)                 # ConvBN(dim, dim, 1)
    p["b1"] = std_layer(4, 1)                 # Bottleneck conv1 (g=4, 1x1)
    p["b2"] = std_layer(2, 3)                 # Bottleneck conv2 (g=2, 3x3)
    p["b3"] = std_layer(4, 1)                 # Bottleneck conv3 (g=4, 1x1)
    p["b4"] = std_layer(2, 3)                 # Bottleneck conv4 (g=2, 3x3)
    p["b5"] = std_layer(4, 1)                 # Bottleneck conv5 (g=4, 1x1)

    # proj: depthwise 3x3 + BN, then pointwise 1x1 (no bias, no BN)
    w_dw = conv_w(C, 1, 3)
    scale, bias = bn_fold(C)
    p["dw"] = {"mat": scale[:, None] * w_dw[:, 0].reshape(C, 9),
               "bias_col": bias.reshape(C, 1),
               "oihw": dense_oihw(w_dw, C), "scale": scale, "bias": bias}
    w_pw = conv_w(C, C, 1)
    p["pw"] = {"mat": w_pw.reshape(C, C), "bias_col": jnp.zeros((C, 1)),
               "oihw": w_pw, "scale": jnp.ones((C,), jnp.float32),
               "bias": jnp.zeros((C,), jnp.float32)}
    return p


# -----------------------------------------------------------------------------
# Pure-JAX reference (lax.conv) for verification
# -----------------------------------------------------------------------------
def _ref_layer(x, layer, k, relu):
    pad = (k - 1) // 2
    y = jax.lax.conv_general_dilated(
        x, layer["oihw"], (1, 1), ((pad, pad), (pad, pad)),
        dimension_numbers=("NCHW", "OIHW", "NCHW"))
    y = (y * layer["scale"].reshape(1, -1, 1, 1)
         + layer["bias"].reshape(1, -1, 1, 1))
    return jnp.maximum(y, 0.0) if relu else y


def ref_forward(x, p):
    l1 = _ref_layer(x, p["l1"], 3, False)
    local = _ref_layer(x, p["l2"], 1, False) + l1
    o = _ref_layer(x, p["b1"], 1, True)
    r1 = o
    o = _ref_layer(o, p["b2"], 3, True)
    r2 = o
    o = _ref_layer(o, p["b3"], 1, True) + r1
    o = _ref_layer(o, p["b4"], 3, True) + r2
    o = _ref_layer(o, p["b5"], 1, True)
    o = o + local
    o = _ref_layer(o, p["dw"], 3, False)
    o = _ref_layer(o, p["pw"], 1, False)
    return o                                   # out[:, :, :H, :W] is a no-op


if __name__ == "__main__":
    B, C, H, W = 2, 16, 16, 16   # C must be divisible by 4 (grouped convs)
    key = jax.random.PRNGKey(0)
    kx, kp = jax.random.split(key)
    x = jax.random.normal(kx, (B, C, H, W), jnp.float32)   # NCHW like PyTorch
    params = init_params(kp, C)

    out = jax.block_until_ready(jax.jit(global_local_forward)(x, params))
    assert out.shape == (B, C, H, W), out.shape

    ref = jax.block_until_ready(jax.jit(ref_forward)(x, params))
    np.testing.assert_allclose(np.asarray(out), np.asarray(ref),
                               rtol=1e-3, atol=1e-3)

    # bfloat16 MXU operands (v6e / v7x fast path); accumulation stays float32.
    fwd_bf16 = jax.jit(functools.partial(global_local_forward,
                                         compute_dtype=jnp.bfloat16))
    out_bf16 = jax.block_until_ready(fwd_bf16(x, params))
    np.testing.assert_allclose(np.asarray(out_bf16), np.asarray(ref),
                               rtol=1e-1, atol=1e-1)

    print("KERNEL_OK")
</pallas_src>

<mosaic_0001>
module attributes {stable_mosaic.version = 11 : i64} {
  func.func @kernel(%arg0: i32, %arg1: memref<1x16x256xf32, #tpu.memory_space<vmem>>, %arg2: memref<9x256xf32, #tpu.memory_space<vmem>>, %arg3: memref<16x144xf32, #tpu.memory_space<vmem>>, %arg4: memref<16x1xf32, #tpu.memory_space<vmem>>, %arg5: memref<16x16xf32, #tpu.memory_space<vmem>>, %arg6: memref<16x1xf32, #tpu.memory_space<vmem>>, %arg7: memref<16x144xf32, #tpu.memory_space<vmem>>, %arg8: memref<16x1xf32, #tpu.memory_space<vmem>>, %arg9: memref<16x16xf32, #tpu.memory_space<vmem>>, %arg10: memref<16x1xf32, #tpu.memory_space<vmem>>, %arg11: memref<16x144xf32, #tpu.memory_space<vmem>>, %arg12: memref<16x1xf32, #tpu.memory_space<vmem>>, %arg13: memref<16x16xf32, #tpu.memory_space<vmem>>, %arg14: memref<16x1xf32, #tpu.memory_space<vmem>>, %arg15: memref<16x9xf32, #tpu.memory_space<vmem>>, %arg16: memref<16x1xf32, #tpu.memory_space<vmem>>, %arg17: memref<16x16xf32, #tpu.memory_space<vmem>>, %arg18: memref<1x16x256xf32, #tpu.memory_space<vmem>>) attributes {dimension_semantics = [#tpu.dimension_semantics<parallel>], iteration_bounds = array<i64: 2>, scalar_prefetch = 0 : i64, scratch_operands = 0 : i64, tpu.core_type = #tpu.core_type<tc>, window_params = [{transform_indices = @transform_0, window_bounds = array<i64: 1, 16, 256>}, {pipeline_mode = #tpu.pipeline_mode<synchronous>, transform_indices = @transform_1, window_bounds = array<i64: 9, 256>}, {pipeline_mode = #tpu.pipeline_mode<synchronous>, transform_indices = @transform_2, window_bounds = array<i64: 16, 144>}, {pipeline_mode = #tpu.pipeline_mode<synchronous>, transform_indices = @transform_3, window_bounds = array<i64: 16, 1>}, {pipeline_mode = #tpu.pipeline_mode<synchronous>, transform_indices = @transform_4, window_bounds = array<i64: 16, 16>}, {pipeline_mode = #tpu.pipeline_mode<synchronous>, transform_indices = @transform_5, window_bounds = array<i64: 16, 1>}, {pipeline_mode = #tpu.pipeline_mode<synchronous>, transform_indices = @transform_6, window_bounds = array<i64: 16, 144>}, {pipeline_mode = #tpu.pipeline_mode<synchronous>, transform_indices = @transform_7, window_bounds = array<i64: 16, 1>}, {pipeline_mode = #tpu.pipeline_mode<synchronous>, transform_indices = @transform_8, window_bounds = array<i64: 16, 16>}, {pipeline_mode = #tpu.pipeline_mode<synchronous>, transform_indices = @transform_9, window_bounds = array<i64: 16, 1>}, {pipeline_mode = #tpu.pipeline_mode<synchronous>, transform_indices = @transform_10, window_bounds = array<i64: 16, 144>}, {pipeline_mode = #tpu.pipeline_mode<synchronous>, transform_indices = @transform_11, window_bounds = array<i64: 16, 1>}, {pipeline_mode = #tpu.pipeline_mode<synchronous>, transform_indices = @transform_12, window_bounds = array<i64: 16, 16>}, {pipeline_mode = #tpu.pipeline_mode<synchronous>, transform_indices = @transform_13, window_bounds = array<i64: 16, 1>}, {pipeline_mode = #tpu.pipeline_mode<synchronous>, transform_indices = @transform_14, window_bounds = array<i64: 16, 9>}, {pipeline_mode = #tpu.pipeline_mode<synchronous>, transform_indices = @transform_15, window_bounds = array<i64: 16, 1>}, {pipeline_mode = #tpu.pipeline_mode<synchronous>, transform_indices = @transform_16, window_bounds = array<i64: 16, 16>}, {transform_indices = @transform_17, window_bounds = array<i64: 1, 16, 256>}]} {
    %c0 = arith.constant 0 : index
    %c0_0 = arith.constant 0 : index
    %0 = vector.load %arg2[%c0, %c0_0] : memref<9x256xf32, #tpu.memory_space<vmem>>, vector<1x256xf32>
    %c1 = arith.constant 1 : index
    %c0_1 = arith.constant 0 : index
    %1 = vector.load %arg2[%c1, %c0_1] : memref<9x256xf32, #tpu.memory_space<vmem>>, vector<1x256xf32>
    %c2 = arith.constant 2 : index
    %c0_2 = arith.constant 0 : index
    %2 = vector.load %arg2[%c2, %c0_2] : memref<9x256xf32, #tpu.memory_space<vmem>>, vector<1x256xf32>
    %c3 = arith.constant 3 : index
    %c0_3 = arith.constant 0 : index
    %3 = vector.load %arg2[%c3, %c0_3] : memref<9x256xf32, #tpu.memory_space<vmem>>, vector<1x256xf32>
    %c4 = arith.constant 4 : index
    %c0_4 = arith.constant 0 : index
    %4 = vector.load %arg2[%c4, %c0_4] : memref<9x256xf32, #tpu.memory_space<vmem>>, vector<1x256xf32>
    %c5 = arith.constant 5 : index
    %c0_5 = arith.constant 0 : index
    %5 = vector.load %arg2[%c5, %c0_5] : memref<9x256xf32, #tpu.memory_space<vmem>>, vector<1x256xf32>
    %c6 = arith.constant 6 : index
    %c0_6 = arith.constant 0 : index
    %6 = vector.load %arg2[%c6, %c0_6] : memref<9x256xf32, #tpu.memory_space<vmem>>, vector<1x256xf32>
    %c7 = arith.constant 7 : index
    %c0_7 = arith.constant 0 : index
    %7 = vector.load %arg2[%c7, %c0_7] : memref<9x256xf32, #tpu.memory_space<vmem>>, vector<1x256xf32>
    %c8 = arith.constant 8 : index
    %c0_8 = arith.constant 0 : index
    %8 = vector.load %arg2[%c8, %c0_8] : memref<9x256xf32, #tpu.memory_space<vmem>>, vector<1x256xf32>
    %c0_9 = arith.constant 0 : index
    %c0_10 = arith.constant 0 : index
    %c0_11 = arith.constant 0 : index
    %9 = vector.load %arg1[%c0_9, %c0_10, %c0_11] : memref<1x16x256xf32, #tpu.memory_space<vmem>>, vector<1x16x256xf32>
    %10 = vector.shape_cast %9 : vector<1x16x256xf32> to vector<16x256xf32>
    %c17_i32 = arith.constant 17 : i32
    %11 = tpu.dynamic_rotate %10 by %c17_i32 dim 1 : vector<16x256xf32>, i32 -> vector<16x256xf32>
    %12 = vector.broadcast %0 : vector<1x256xf32> to vector<16x256xf32>
    %13 = arith.mulf %11, %12 : vector<16x256xf32>
    %c16_i32 = arith.constant 16 : i32
    %14 = tpu.dynamic_rotate %10 by %c16_i32 dim 1 : vector<16x256xf32>, i32 -> vector<16x256xf32>
    %15 = vector.broadcast %1 : vector<1x256xf32> to vector<16x256xf32>
    %16 = arith.mulf %14, %15 : vector<16x256xf32>
    %c15_i32 = arith.constant 15 : i32
    %17 = tpu.dynamic_rotate %10 by %c15_i32 dim 1 : vector<16x256xf32>, i32 -> vector<16x256xf32>
    %18 = vector.broadcast %2 : vector<1x256xf32> to vector<16x256xf32>
    %19 = arith.mulf %17, %18 : vector<16x256xf32>
    %c1_i32 = arith.constant 1 : i32
    %20 = tpu.dynamic_rotate %10 by %c1_i32 dim 1 : vector<16x256xf32>, i32 -> vector<16x256xf32>
    %21 = vector.broadcast %3 : vector<1x256xf32> to vector<16x256xf32>
    %22 = arith.mulf %20, %21 : vector<16x256xf32>
    %23 = vector.broadcast %4 : vector<1x256xf32> to vector<16x256xf32>
    %24 = arith.mulf %10, %23 : vector<16x256xf32>
    %c255_i32 = arith.constant 255 : i32
    %25 = tpu.dynamic_rotate %10 by %c255_i32 dim 1 : vector<16x256xf32>, i32 -> vector<16x256xf32>
    %26 = vector.broadcast %5 : vector<1x256xf32> to vector<16x256xf32>
    %27 = arith.mulf %25, %26 : vector<16x256xf32>
    %c241_i32 = arith.constant 241 : i32
    %28 = tpu.dynamic_rotate %10 by %c241_i32 dim 1 : vector<16x256xf32>, i32 -> vector<16x256xf32>
    %29 = vector.broadcast %6 : vector<1x256xf32> to vector<16x256xf32>
    %30 = arith.mulf %28, %29 : vector<16x256xf32>
    %c240_i32 = arith.constant 240 : i32
    %31 = tpu.dynamic_rotate %10 by %c240_i32 dim 1 : vector<16x256xf32>, i32 -> vector<16x256xf32>
    %32 = vector.broadcast %7 : vector<1x256xf32> to vector<16x256xf32>
    %33 = arith.mulf %31, %32 : vector<16x256xf32>
    %c239_i32 = arith.constant 239 : i32
    %34 = tpu.dynamic_rotate %10 by %c239_i32 dim 1 : vector<16x256xf32>, i32 -> vector<16x256xf32>
    %35 = vector.broadcast %8 : vector<1x256xf32> to vector<16x256xf32>
    %36 = arith.mulf %34, %35 : vector<16x256xf32>
    %37 = tpu.concatenate %13, %16, %19, %22, %24, %27, %30, %33, %36 in 0 : vector<16x256xf32>, vector<16x256xf32>, vector<16x256xf32>, vector<16x256xf32>, vector<16x256xf32>, vector<16x256xf32>, vector<16x256xf32>, vector<16x256xf32>, vector<16x256xf32> -> vector<144x256xf32>
    %c0_12 = arith.constant 0 : index
    %c0_13 = arith.constant 0 : index
    %38 = vector.load %arg3[%c0_12, %c0_13] : memref<16x144xf32, #tpu.memory_space<vmem>>, vector<16x144xf32>
    %cst = arith.constant dense<0.000000e+00> : vector<16x256xf32>
    %39 = tpu.matmul %38, %37, %cst {dimension_numbers = #tpu.dot_dimension_numbers<[1], [0], [0], [1], [0, 0, 1, 1], [], []>} : vector<16x144xf32>, vector<144x256xf32>, vector<16x256xf32> -> vector<16x256xf32>
    %c0_14 = arith.constant 0 : index
    %c0_15 = arith.constant 0 : index
    %40 = vector.load %arg4[%c0_14, %c0_15] : memref<16x1xf32, #tpu.memory_space<vmem>>, vector<16x1xf32>
    %41 = vector.broadcast %40 : vector<16x1xf32> to vector<16x256xf32>
    %42 = arith.addf %39, %41 : vector<16x256xf32>
    %c0_16 = arith.constant 0 : index
    %c0_17 = arith.constant 0 : index
    %43 = vector.load %arg5[%c0_16, %c0_17] : memref<16x16xf32, #tpu.memory_space<vmem>>, vector<16x16xf32>
    %cst_18 = arith.constant dense<0.000000e+00> : vector<16x256xf32>
    %44 = tpu.matmul %43, %10, %cst_18 {dimension_numbers = #tpu.dot_dimension_numbers<[1], [0], [0], [1], [0, 0, 1, 1], [], []>} : vector<16x16xf32>, vector<16x256xf32>, vector<16x256xf32> -> vector<16x256xf32>
    %c0_19 = arith.constant 0 : index
    %c0_20 = arith.constant 0 : index
    %45 = vector.load %arg6[%c0_19, %c0_20] : memref<16x1xf32, #tpu.memory_space<vmem>>, vector<16x1xf32>
    %46 = vector.broadcast %45 : vector<16x1xf32> to vector<16x256xf32>
    %47 = arith.addf %44, %46 : vector<16x256xf32>
    %cst_21 = arith.constant 0.000000e+00 : f32
    %48 = vector.broadcast %cst_21 : f32 to vector<16x256xf32>
    %49 = arith.maximumf %47, %48 : vector<16x256xf32>
    %c17_i32_22 = arith.constant 17 : i32
    %50 = tpu.dynamic_rotate %49 by %c17_i32_22 dim 1 : vector<16x256xf32>, i32 -> vector<16x256xf32>
    %51 = vector.broadcast %0 : vector<1x256xf32> to vector<16x256xf32>
    %52 = arith.mulf %50, %51 : vector<16x256xf32>
    %c16_i32_23 = arith.constant 16 : i32
    %53 = tpu.dynamic_rotate %49 by %c16_i32_23 dim 1 : vector<16x256xf32>, i32 -> vector<16x256xf32>
    %54 = vector.broadcast %1 : vector<1x256xf32> to vector<16x256xf32>
    %55 = arith.mulf %53, %54 : vector<16x256xf32>
    %c15_i32_24 = arith.constant 15 : i32
    %56 = tpu.dynamic_rotate %49 by %c15_i32_24 dim 1 : vector<16x256xf32>, i32 -> vector<16x256xf32>
    %57 = vector.broadcast %2 : vector<1x256xf32> to vector<16x256xf32>
    %58 = arith.mulf %56, %57 : vector<16x256xf32>
    %c1_i32_25 = arith.constant 1 : i32
    %59 = tpu.dynamic_rotate %49 by %c1_i32_25 dim 1 : vector<16x256xf32>, i32 -> vector<16x256xf32>
    %60 = vector.broadcast %3 : vector<1x256xf32> to vector<16x256xf32>
    %61 = arith.mulf %59, %60 : vector<16x256xf32>
    %62 = vector.broadcast %4 : vector<1x256xf32> to vector<16x256xf32>
    %63 = arith.mulf %49, %62 : vector<16x256xf32>
    %c255_i32_26 = arith.constant 255 : i32
    %64 = tpu.dynamic_rotate %49 by %c255_i32_26 dim 1 : vector<16x256xf32>, i32 -> vector<16x256xf32>
    %65 = vector.broadcast %5 : vector<1x256xf32> to vector<16x256xf32>
    %66 = arith.mulf %64, %65 : vector<16x256xf32>
    %c241_i32_27 = arith.constant 241 : i32
    %67 = tpu.dynamic_rotate %49 by %c241_i32_27 dim 1 : vector<16x256xf32>, i32 -> vector<16x256xf32>
    %68 = vector.broadcast %6 : vector<1x256xf32> to vector<16x256xf32>
    %69 = arith.mulf %67, %68 : vector<16x256xf32>
    %c240_i32_28 = arith.constant 240 : i32
    %70 = tpu.dynamic_rotate %49 by %c240_i32_28 dim 1 : vector<16x256xf32>, i32 -> vector<16x256xf32>
    %71 = vector.broadcast %7 : vector<1x256xf32> to vector<16x256xf32>
    %72 = arith.mulf %70, %71 : vector<16x256xf32>
    %c239_i32_29 = arith.constant 239 : i32
    %73 = tpu.dynamic_rotate %49 by %c239_i32_29 dim 1 : vector<16x256xf32>, i32 -> vector<16x256xf32>
    %74 = vector.broadcast %8 : vector<1x256xf32> to vector<16x256xf32>
    %75 = arith.mulf %73, %74 : vector<16x256xf32>
    %76 = tpu.concatenate %52, %55, %58, %61, %63, %66, %69, %72, %75 in 0 : vector<16x256xf32>, vector<16x256xf32>, vector<16x256xf32>, vector<16x256xf32>, vector<16x256xf32>, vector<16x256xf32>, vector<16x256xf32>, vector<16x256xf32>, vector<16x256xf32> -> vector<144x256xf32>
    %c0_30 = arith.constant 0 : index
    %c0_31 = arith.constant 0 : index
    %77 = vector.load %arg7[%c0_30, %c0_31] : memref<16x144xf32, #tpu.memory_space<vmem>>, vector<16x144xf32>
    %cst_32 = arith.constant dense<0.000000e+00> : vector<16x256xf32>
    %78 = tpu.matmul %77, %76, %cst_32 {dimension_numbers = #tpu.dot_dimension_numbers<[1], [0], [0], [1], [0, 0, 1, 1], [], []>} : vector<16x144xf32>, vector<144x256xf32>, vector<16x256xf32> -> vector<16x256xf32>
    %c0_33 = arith.constant 0 : index
    %c0_34 = arith.constant 0 : index
    %79 = vector.load %arg8[%c0_33, %c0_34] : memref<16x1xf32, #tpu.memory_space<vmem>>, vector<16x1xf32>
    %80 = vector.broadcast %79 : vector<16x1xf32> to vector<16x256xf32>
    %81 = arith.addf %78, %80 : vector<16x256xf32>
    %cst_35 = arith.constant 0.000000e+00 : f32
    %82 = vector.broadcast %cst_35 : f32 to vector<16x256xf32>
    %83 = arith.maximumf %81, %82 : vector<16x256xf32>
    %c0_36 = arith.constant 0 : index
    %c0_37 = arith.constant 0 : index
    %84 = vector.load %arg9[%c0_36, %c0_37] : memref<16x16xf32, #tpu.memory_space<vmem>>, vector<16x16xf32>
    %cst_38 = arith.constant dense<0.000000e+00> : vector<16x256xf32>
    %85 = tpu.matmul %84, %83, %cst_38 {dimension_numbers = #tpu.dot_dimension_numbers<[1], [0], [0], [1], [0, 0, 1, 1], [], []>} : vector<16x16xf32>, vector<16x256xf32>, vector<16x256xf32> -> vector<16x256xf32>
    %c0_39 = arith.constant 0 : index
    %c0_40 = arith.constant 0 : index
    %86 = vector.load %arg10[%c0_39, %c0_40] : memref<16x1xf32, #tpu.memory_space<vmem>>, vector<16x1xf32>
    %87 = vector.broadcast %86 : vector<16x1xf32> to vector<16x256xf32>
    %88 = arith.addf %85, %87 : vector<16x256xf32>
    %cst_41 = arith.constant 0.000000e+00 : f32
    %89 = vector.broadcast %cst_41 : f32 to vector<16x256xf32>
    %90 = arith.maximumf %88, %89 : vector<16x256xf32>
    %91 = arith.addf %90, %49 : vector<16x256xf32>
    %c17_i32_42 = arith.constant 17 : i32
    %92 = tpu.dynamic_rotate %91 by %c17_i32_42 dim 1 : vector<16x256xf32>, i32 -> vector<16x256xf32>
    %93 = vector.broadcast %0 : vector<1x256xf32> to vector<16x256xf32>
    %94 = arith.mulf %92, %93 : vector<16x256xf32>
    %c16_i32_43 = arith.constant 16 : i32
    %95 = tpu.dynamic_rotate %91 by %c16_i32_43 dim 1 : vector<16x256xf32>, i32 -> vector<16x256xf32>
    %96 = vector.broadcast %1 : vector<1x256xf32> to vector<16x256xf32>
    %97 = arith.mulf %95, %96 : vector<16x256xf32>
    %c15_i32_44 = arith.constant 15 : i32
    %98 = tpu.dynamic_rotate %91 by %c15_i32_44 dim 1 : vector<16x256xf32>, i32 -> vector<16x256xf32>
    %99 = vector.broadcast %2 : vector<1x256xf32> to vector<16x256xf32>
    %100 = arith.mulf %98, %99 : vector<16x256xf32>
    %c1_i32_45 = arith.constant 1 : i32
    %101 = tpu.dynamic_rotate %91 by %c1_i32_45 dim 1 : vector<16x256xf32>, i32 -> vector<16x256xf32>
    %102 = vector.broadcast %3 : vector<1x256xf32> to vector<16x256xf32>
    %103 = arith.mulf %101, %102 : vector<16x256xf32>
    %104 = vector.broadcast %4 : vector<1x256xf32> to vector<16x256xf32>
    %105 = arith.mulf %91, %104 : vector<16x256xf32>
    %c255_i32_46 = arith.constant 255 : i32
    %106 = tpu.dynamic_rotate %91 by %c255_i32_46 dim 1 : vector<16x256xf32>, i32 -> vector<16x256xf32>
    %107 = vector.broadcast %5 : vector<1x256xf32> to vector<16x256xf32>
    %108 = arith.mulf %106, %107 : vector<16x256xf32>
    %c241_i32_47 = arith.constant 241 : i32
    %109 = tpu.dynamic_rotate %91 by %c241_i32_47 dim 1 : vector<16x256xf32>, i32 -> vector<16x256xf32>
    %110 = vector.broadcast %6 : vector<1x256xf32> to vector<16x256xf32>
    %111 = arith.mulf %109, %110 : vector<16x256xf32>
    %c240_i32_48 = arith.constant 240 : i32
    %112 = tpu.dynamic_rotate %91 by %c240_i32_48 dim 1 : vector<16x256xf32>, i32 -> vector<16x256xf32>
    %113 = vector.broadcast %7 : vector<1x256xf32> to vector<16x256xf32>
    %114 = arith.mulf %112, %113 : vector<16x256xf32>
    %c239_i32_49 = arith.constant 239 : i32
    %115 = tpu.dynamic_rotate %91 by %c239_i32_49 dim 1 : vector<16x256xf32>, i32 -> vector<16x256xf32>
    %116 = vector.broadcast %8 : vector<1x256xf32> to vector<16x256xf32>
    %117 = arith.mulf %115, %116 : vector<16x256xf32>
    %118 = tpu.concatenate %94, %97, %100, %103, %105, %108, %111, %114, %117 in 0 : vector<16x256xf32>, vector<16x256xf32>, vector<16x256xf32>, vector<16x256xf32>, vector<16x256xf32>, vector<16x256xf32>, vector<16x256xf32>, vector<16x256xf32>, vector<16x256xf32> -> vector<144x256xf32>
    %c0_50 = arith.constant 0 : index
    %c0_51 = arith.constant 0 : index
    %119 = vector.load %arg11[%c0_50, %c0_51] : memref<16x144xf32, #tpu.memory_space<vmem>>, vector<16x144xf32>
    %cst_52 = arith.constant dense<0.000000e+00> : vector<16x256xf32>
    %120 = tpu.matmul %119, %118, %cst_52 {dimension_numbers = #tpu.dot_dimension_numbers<[1], [0], [0], [1], [0, 0, 1, 1], [], []>} : vector<16x144xf32>, vector<144x256xf32>, vector<16x256xf32> -> vector<16x256xf32>
    %c0_53 = arith.constant 0 : index
    %c0_54 = arith.constant 0 : index
    %121 = vector.load %arg12[%c0_53, %c0_54] : memref<16x1xf32, #tpu.memory_space<vmem>>, vector<16x1xf32>
    %122 = vector.broadcast %121 : vector<16x1xf32> to vector<16x256xf32>
    %123 = arith.addf %120, %122 : vector<16x256xf32>
    %cst_55 = arith.constant 0.000000e+00 : f32
    %124 = vector.broadcast %cst_55 : f32 to vector<16x256xf32>
    %125 = arith.maximumf %123, %124 : vector<16x256xf32>
    %126 = arith.addf %125, %83 : vector<16x256xf32>
    %c0_56 = arith.constant 0 : index
    %c0_57 = arith.constant 0 : index
    %127 = vector.load %arg13[%c0_56, %c0_57] : memref<16x16xf32, #tpu.memory_space<vmem>>, vector<16x16xf32>
    %cst_58 = arith.constant dense<0.000000e+00> : vector<16x256xf32>
    %128 = tpu.matmul %127, %126, %cst_58 {dimension_numbers = #tpu.dot_dimension_numbers<[1], [0], [0], [1], [0, 0, 1, 1], [], []>} : vector<16x16xf32>, vector<16x256xf32>, vector<16x256xf32> -> vector<16x256xf32>
    %c0_59 = arith.constant 0 : index
    %c0_60 = arith.constant 0 : index
    %129 = vector.load %arg14[%c0_59, %c0_60] : memref<16x1xf32, #tpu.memory_space<vmem>>, vector<16x1xf32>
    %130 = vector.broadcast %129 : vector<16x1xf32> to vector<16x256xf32>
    %131 = arith.addf %128, %130 : vector<16x256xf32>
    %cst_61 = arith.constant 0.000000e+00 : f32
    %132 = vector.broadcast %cst_61 : f32 to vector<16x256xf32>
    %133 = arith.maximumf %131, %132 : vector<16x256xf32>
    %134 = arith.addf %133, %42 : vector<16x256xf32>
    %c17_i32_62 = arith.constant 17 : i32
    %135 = tpu.dynamic_rotate %134 by %c17_i32_62 dim 1 : vector<16x256xf32>, i32 -> vector<16x256xf32>
    %136 = vector.broadcast %0 : vector<1x256xf32> to vector<16x256xf32>
    %137 = arith.mulf %135, %136 : vector<16x256xf32>
    %c16_i32_63 = arith.constant 16 : i32
    %138 = tpu.dynamic_rotate %134 by %c16_i32_63 dim 1 : vector<16x256xf32>, i32 -> vector<16x256xf32>
    %139 = vector.broadcast %1 : vector<1x256xf32> to vector<16x256xf32>
    %140 = arith.mulf %138, %139 : vector<16x256xf32>
    %c15_i32_64 = arith.constant 15 : i32
    %141 = tpu.dynamic_rotate %134 by %c15_i32_64 dim 1 : vector<16x256xf32>, i32 -> vector<16x256xf32>
    %142 = vector.broadcast %2 : vector<1x256xf32> to vector<16x256xf32>
    %143 = arith.mulf %141, %142 : vector<16x256xf32>
    %c1_i32_65 = arith.constant 1 : i32
    %144 = tpu.dynamic_rotate %134 by %c1_i32_65 dim 1 : vector<16x256xf32>, i32 -> vector<16x256xf32>
    %145 = vector.broadcast %3 : vector<1x256xf32> to vector<16x256xf32>
    %146 = arith.mulf %144, %145 : vector<16x256xf32>
    %147 = vector.broadcast %4 : vector<1x256xf32> to vector<16x256xf32>
    %148 = arith.mulf %134, %147 : vector<16x256xf32>
    %c255_i32_66 = arith.constant 255 : i32
    %149 = tpu.dynamic_rotate %134 by %c255_i32_66 dim 1 : vector<16x256xf32>, i32 -> vector<16x256xf32>
    %150 = vector.broadcast %5 : vector<1x256xf32> to vector<16x256xf32>
    %151 = arith.mulf %149, %150 : vector<16x256xf32>
    %c241_i32_67 = arith.constant 241 : i32
    %152 = tpu.dynamic_rotate %134 by %c241_i32_67 dim 1 : vector<16x256xf32>, i32 -> vector<16x256xf32>
    %153 = vector.broadcast %6 : vector<1x256xf32> to vector<16x256xf32>
    %154 = arith.mulf %152, %153 : vector<16x256xf32>
    %c240_i32_68 = arith.constant 240 : i32
    %155 = tpu.dynamic_rotate %134 by %c240_i32_68 dim 1 : vector<16x256xf32>, i32 -> vector<16x256xf32>
    %156 = vector.broadcast %7 : vector<1x256xf32> to vector<16x256xf32>
    %157 = arith.mulf %155, %156 : vector<16x256xf32>
    %c239_i32_69 = arith.constant 239 : i32
    %158 = tpu.dynamic_rotate %134 by %c239_i32_69 dim 1 : vector<16x256xf32>, i32 -> vector<16x256xf32>
    %159 = vector.broadcast %8 : vector<1x256xf32> to vector<16x256xf32>
    %160 = arith.mulf %158, %159 : vector<16x256xf32>
    %c0_70 = arith.constant 0 : index
    %c0_71 = arith.constant 0 : index
    %161 = vector.load %arg15[%c0_70, %c0_71] : memref<16x9xf32, #tpu.memory_space<vmem>>, vector<16x1xf32>
    %162 = vector.broadcast %161 : vector<16x1xf32> to vector<16x256xf32>
    %163 = arith.mulf %162, %137 : vector<16x256xf32>
    %c0_72 = arith.constant 0 : index
    %c1_73 = arith.constant 1 : index
    %164 = vector.load %arg15[%c0_72, %c1_73] : memref<16x9xf32, #tpu.memory_space<vmem>>, vector<16x1xf32>
    %165 = vector.broadcast %164 : vector<16x1xf32> to vector<16x256xf32>
    %166 = arith.mulf %165, %140 : vector<16x256xf32>
    %167 = arith.addf %163, %166 : vector<16x256xf32>
    %c0_74 = arith.constant 0 : index
    %c2_75 = arith.constant 2 : index
    %168 = vector.load %arg15[%c0_74, %c2_75] : memref<16x9xf32, #tpu.memory_space<vmem>>, vector<16x1xf32>
    %169 = vector.broadcast %168 : vector<16x1xf32> to vector<16x256xf32>
    %170 = arith.mulf %169, %143 : vector<16x256xf32>
    %171 = arith.addf %167, %170 : vector<16x256xf32>
    %c0_76 = arith.constant 0 : index
    %c3_77 = arith.constant 3 : index
    %172 = vector.load %arg15[%c0_76, %c3_77] : memref<16x9xf32, #tpu.memory_space<vmem>>, vector<16x1xf32>
    %173 = vector.broadcast %172 : vector<16x1xf32> to vector<16x256xf32>
    %174 = arith.mulf %173, %146 : vector<16x256xf32>
    %175 = arith.addf %171, %174 : vector<16x256xf32>
    %c0_78 = arith.constant 0 : index
    %c4_79 = arith.constant 4 : index
    %176 = vector.load %arg15[%c0_78, %c4_79] : memref<16x9xf32, #tpu.memory_space<vmem>>, vector<16x1xf32>
    %177 = vector.broadcast %176 : vector<16x1xf32> to vector<16x256xf32>
    %178 = arith.mulf %177, %148 : vector<16x256xf32>
    %179 = arith.addf %175, %178 : vector<16x256xf32>
    %c0_80 = arith.constant 0 : index
    %c5_81 = arith.constant 5 : index
    %180 = vector.load %arg15[%c0_80, %c5_81] : memref<16x9xf32, #tpu.memory_space<vmem>>, vector<16x1xf32>
    %181 = vector.broadcast %180 : vector<16x1xf32> to vector<16x256xf32>
    %182 = arith.mulf %181, %151 : vector<16x256xf32>
    %183 = arith.addf %179, %182 : vector<16x256xf32>
    %c0_82 = arith.constant 0 : index
    %c6_83 = arith.constant 6 : index
    %184 = vector.load %arg15[%c0_82, %c6_83] : memref<16x9xf32, #tpu.memory_space<vmem>>, vector<16x1xf32>
    %185 = vector.broadcast %184 : vector<16x1xf32> to vector<16x256xf32>
    %186 = arith.mulf %185, %154 : vector<16x256xf32>
    %187 = arith.addf %183, %186 : vector<16x256xf32>
    %c0_84 = arith.constant 0 : index
    %c7_85 = arith.constant 7 : index
    %188 = vector.load %arg15[%c0_84, %c7_85] : memref<16x9xf32, #tpu.memory_space<vmem>>, vector<16x1xf32>
    %189 = vector.broadcast %188 : vector<16x1xf32> to vector<16x256xf32>
    %190 = arith.mulf %189, %157 : vector<16x256xf32>
    %191 = arith.addf %187, %190 : vector<16x256xf32>
    %c0_86 = arith.constant 0 : index
    %c8_87 = arith.constant 8 : index
    %192 = vector.load %arg15[%c0_86, %c8_87] : memref<16x9xf32, #tpu.memory_space<vmem>>, vector<16x1xf32>
    %193 = vector.broadcast %192 : vector<16x1xf32> to vector<16x256xf32>
    %194 = arith.mulf %193, %160 : vector<16x256xf32>
    %195 = arith.addf %191, %194 : vector<16x256xf32>
    %c0_88 = arith.constant 0 : index
    %c0_89 = arith.constant 0 : index
    %196 = vector.load %arg16[%c0_88, %c0_89] : memref<16x1xf32, #tpu.memory_space<vmem>>, vector<16x1xf32>
    %197 = vector.broadcast %196 : vector<16x1xf32> to vector<16x256xf32>
    %198 = arith.addf %195, %197 : vector<16x256xf32>
    %c0_90 = arith.constant 0 : index
    %c0_91 = arith.constant 0 : index
    %199 = vector.load %arg17[%c0_90, %c0_91] : memref<16x16xf32, #tpu.memory_space<vmem>>, vector<16x16xf32>
    %cst_92 = arith.constant dense<0.000000e+00> : vector<16x256xf32>
    %200 = tpu.matmul %199, %198, %cst_92 {dimension_numbers = #tpu.dot_dimension_numbers<[1], [0], [0], [1], [0, 0, 1, 1], [], []>} : vector<16x16xf32>, vector<16x256xf32>, vector<16x256xf32> -> vector<16x256xf32>
    %c0_93 = arith.constant 0 : index
    %c0_94 = arith.constant 0 : index
    %c0_95 = arith.constant 0 : index
    %201 = vector.load %arg18[%c0_93, %c0_94, %c0_95] : memref<1x16x256xf32, #tpu.memory_space<vmem>>, vector<1x16x256xf32>
    %202 = vector.shape_cast %201 : vector<1x16x256xf32> to vector<16x256xf32>
    %203 = vector.shape_cast %200 : vector<16x256xf32> to vector<1x16x256xf32>
    tpu.vector_store %arg18[%c0_93, %c0_94, %c0_95], %203 {strides = array<i32>} : memref<1x16x256xf32, #tpu.memory_space<vmem>>, vector<1x16x256xf32>,
    return
  }
  func.func @transform_0(%arg0: i32) -> (i32, i32, i32) {
    %c0_i32 = arith.constant 0 : i32
    %c0_i32_0 = arith.constant 0 : i32
    %c0_i32_1 = arith.constant 0 : i32
    return %arg0, %c0_i32, %c0_i32_0 : i32, i32, i32
  }
  func.func @transform_1(%arg0: i32) -> (i32, i32) {
    %c0_i32 = arith.constant 0 : i32
    %c0_i32_0 = arith.constant 0 : i32
    %c0_i32_1 = arith.constant 0 : i32
    return %c0_i32, %c0_i32_0 : i32, i32
  }
  func.func @transform_2(%arg0: i32) -> (i32, i32) {
    %c0_i32 = arith.constant 0 : i32
    %c0_i32_0 = arith.constant 0 : i32
    %c0_i32_1 = arith.constant 0 : i32
    return %c0_i32, %c0_i32_0 : i32, i32
  }
  func.func @transform_3(%arg0: i32) -> (i32, i32) {
    %c0_i32 = arith.constant 0 : i32
    %c0_i32_0 = arith.constant 0 : i32
    %c0_i32_1 = arith.constant 0 : i32
    return %c0_i32, %c0_i32_0 : i32, i32
  }
  func.func @transform_4(%arg0: i32) -> (i32, i32) {
    %c0_i32 = arith.constant 0 : i32
    %c0_i32_0 = arith.constant 0 : i32
    %c0_i32_1 = arith.constant 0 : i32
    return %c0_i32, %c0_i32_0 : i32, i32
  }
  func.func @transform_5(%arg0: i32) -> (i32, i32) {
    %c0_i32 = arith.constant 0 : i32
    %c0_i32_0 = arith.constant 0 : i32
    %c0_i32_1 = arith.constant 0 : i32
    return %c0_i32, %c0_i32_0 : i32, i32
  }
  func.func @transform_6(%arg0: i32) -> (i32, i32) {
    %c0_i32 = arith.constant 0 : i32
    %c0_i32_0 = arith.constant 0 : i32
    %c0_i32_1 = arith.constant 0 : i32
    return %c0_i32, %c0_i32_0 : i32, i32
  }
  func.func @transform_7(%arg0: i32) -> (i32, i32) {
    %c0_i32 = arith.constant 0 : i32
    %c0_i32_0 = arith.constant 0 : i32
    %c0_i32_1 = arith.constant 0 : i32
    return %c0_i32, %c0_i32_0 : i32, i32
  }
  func.func @transform_8(%arg0: i32) -> (i32, i32) {
    %c0_i32 = arith.constant 0 : i32
    %c0_i32_0 = arith.constant 0 : i32
    %c0_i32_1 = arith.constant 0 : i32
    return %c0_i32, %c0_i32_0 : i32, i32
  }
  func.func @transform_9(%arg0: i32) -> (i32, i32) {
    %c0_i32 = arith.constant 0 : i32
    %c0_i32_0 = arith.constant 0 : i32
    %c0_i32_1 = arith.constant 0 : i32
    return %c0_i32, %c0_i32_0 : i32, i32
  }
  func.func @transform_10(%arg0: i32) -> (i32, i32) {
    %c0_i32 = arith.constant 0 : i32
    %c0_i32_0 = arith.constant 0 : i32
    %c0_i32_1 = arith.constant 0 : i32
    return %c0_i32, %c0_i32_0 : i32, i32
  }
  func.func @transform_11(%arg0: i32) -> (i32, i32) {
    %c0_i32 = arith.constant 0 : i32
    %c0_i32_0 = arith.constant 0 : i32
    %c0_i32_1 = arith.constant 0 : i32
    return %c0_i32, %c0_i32_0 : i32, i32
  }
  func.func @transform_12(%arg0: i32) -> (i32, i32) {
    %c0_i32 = arith.constant 0 : i32
    %c0_i32_0 = arith.constant 0 : i32
    %c0_i32_1 = arith.constant 0 : i32
    return %c0_i32, %c0_i32_0 : i32, i32
  }
  func.func @transform_13(%arg0: i32) -> (i32, i32) {
    %c0_i32 = arith.constant 0 : i32
    %c0_i32_0 = arith.constant 0 : i32
    %c0_i32_1 = arith.constant 0 : i32
    return %c0_i32, %c0_i32_0 : i32, i32
  }
  func.func @transform_14(%arg0: i32) -> (i32, i32) {
    %c0_i32 = arith.constant 0 : i32
    %c0_i32_0 = arith.constant 0 : i32
    %c0_i32_1 = arith.constant 0 : i32
    return %c0_i32, %c0_i32_0 : i32, i32
  }
  func.func @transform_15(%arg0: i32) -> (i32, i32) {
    %c0_i32 = arith.constant 0 : i32
    %c0_i32_0 = arith.constant 0 : i32
    %c0_i32_1 = arith.constant 0 : i32
    return %c0_i32, %c0_i32_0 : i32, i32
  }
  func.func @transform_16(%arg0: i32) -> (i32, i32) {
    %c0_i32 = arith.constant 0 : i32
    %c0_i32_0 = arith.constant 0 : i32
    %c0_i32_1 = arith.constant 0 : i32
    return %c0_i32, %c0_i32_0 : i32, i32
  }
  func.func @transform_17(%arg0: i32) -> (i32, i32, i32) {
    %c0_i32 = arith.constant 0 : i32
    %c0_i32_0 = arith.constant 0 : i32
    %c0_i32_1 = arith.constant 0 : i32
    return %arg0, %c0_i32, %c0_i32_0 : i32, i32, i32
  }
}

</mosaic_0001>

<bundles_post_ra>
// kernel: global_local_forward.1
= control target key start
LH: loop header
LB: loop body
LE: loop exit
PB: predicated region body
PF: predicated region fallthrough
CT: control target
= control target key end

     0   :  { %s2452_s24 = smov 0   ;;  %s3584_s0 = inlined_call_operand.vmem [shape: f32[2,16,256], index: 0, kind: input, shape index: {}]   ;;  %s3585_s1 = inlined_call_operand.vmem [shape: f32[9,256], index: 1, kind: input, shape index: {}]   ;;  %s3586_s2 = inlined_call_operand.vmem [shape: f32[16,144], index: 2, kind: input, shape index: {}]   ;;  %s3587_s3 = inlined_call_operand.vmem [shape: f32[16,1], index: 3, kind: input, shape index: {}]   ;;  %s3588_s4 = inlined_call_operand.vmem [shape: f32[16,16], index: 4, kind: input, shape index: {}]   ;;  %s3589_s5 = inlined_call_operand.vmem [shape: f32[16,1], index: 5, kind: input, shape index: {}]   ;;  %s3590_s6 = inlined_call_operand.vmem [shape: f32[16,144], index: 6, kind: input, shape index: {}]   ;;  %s3591_s7 = inlined_call_operand.vmem [shape: f32[16,1], index: 7, kind: input, shape index: {}]   ;;  %s3592_s8 = inlined_call_operand.vmem [shape: f32[16,16], index: 8, kind: input, shape index: {}]   ;;  %s3593_s9 = inlined_call_operand.vmem [shape: f32[16,1], index: 9, kind: input, shape index: {}]   ;;  %s3594_s10 = inlined_call_operand.vmem [shape: f32[16,144], index: 10, kind: input, shape index: {}]   ;;  %s3595_s11 = inlined_call_operand.vmem [shape: f32[16,1], index: 11, kind: input, shape index: {}]   ;;  %s3596_s12 = inlined_call_operand.vmem [shape: f32[16,16], index: 12, kind: input, shape index: {}]   ;;  %s3597_s13 = inlined_call_operand.vmem [shape: f32[16,1], index: 13, kind: input, shape index: {}]   ;;  %s3598_s14 = inlined_call_operand.vmem [shape: f32[16,9], index: 14, kind: input, shape index: {}]   ;;  %s3599_s15 = inlined_call_operand.vmem [shape: f32[16,1], index: 15, kind: input, shape index: {}]   ;;  %s3600_s16 = inlined_call_operand.vmem [shape: f32[16,16], index: 16, kind: input, shape index: {}]   ;;  %s3601_s17 = inlined_call_operand.vmem [shape: f32[2,16,256], index: 17, kind: output, shape index: {}]  }
   0x1   :  { %3626 = sst [smem:[#allocation2_spill]] %s3584_s0 }
   0x2   :  { %3627 = sst [smem:[#allocation3_spill]] %s3585_s1 }
   0x3   :  { %3628 = sst [smem:[#allocation4_spill]] %s3586_s2 }
   0x4   :  { %3629 = sst [smem:[#allocation5_spill]] %s3588_s4 }
   0x5   :  { %3630 = sst [smem:[#allocation6_spill]] %s3589_s5 }
   0x6   :  { %3631 = sst [smem:[#allocation7_spill]] %s3590_s6 }
   0x7 LB: > { %s2132_s25 = sadd.s32 4294967295, %s2342_s24   ;;  %p2136_p0 = scmp.ge.s32.totalorder %s2342_s24, 1  ;;  %s2342_s24 = sphi %s2452_s24, %s27_s24  }
   0x8   : > { %p487_p1 = scmp.lt.s32.totalorder %s2342_s24, 3 }
   0xa   : > { %p488_p2 = pnand %p2136_p0, %p487_p1 }
   0xb   : > { %p539_p3 = scmp.lt.s32.totalorder (!%p488_p2), %s2132_s25, 1  ;;  %s3632_s29 = sld [smem:[#allocation2_spill]] (!%p488_p2)  ;;  %v578_v4 = vlaneseq (!%p488_p2)  ;;  %vm827_vm0 = vcmask (!%p488_p2), 130048   ;;  %v2352_v22 = vmov (!%p488_p2), 0  }
   0xc   : > { %491 = sbr.rel (%p488_p2) target bundleno = 2129 (0x851), region = 88  ;;  %s3616_s30 = smov (!%p488_p2), 17   ;;  %2317 = vset.pattern.permute.xlu0 (!%p488_p2), %v2352_v22  ;;  %2318 = vset.pattern.permute.xlu1 (!%p488_p2), %v2352_v22 }
   0xd   : > { %s3614_s18 = smov (!%p488_p2), 16   ;;  %v587_v5 = vshrl.u32 (!%p488_p2), %v578_v4, 7  ;;  %s3612_s19 = smov (!%p488_p2), 15   ;;  %v2589_v23 = vand.u32 (!%p488_p2), 127, %v578_v4 }
   0xe   : > { %s3633_s21 = sld [smem:[#allocation3_spill]] (!%p488_p2)  ;;  %s3610_s22 = smov (!%p488_p2), 1  }
   0xf   : > { %v2496_v6 = vsub.s32 (!%p488_p2), 1, %v587_v5  ;;  %v2498_v7 = vsub.s32 (!%p488_p2), 0, %v587_v5  ;;  %s3608_s23 = smov (!%p488_p2), 127   ;;  %s3606_s27 = smov (!%p488_p2), 113   ;;  %vm580_vm1 = vcmp.lt.s32.totalorder (!%p488_p2), %v2589_v23, 17  ;;  %vm608_vm2 = vcmp.lt.s32.totalorder (!%p488_p2), %v2589_v23, 16 }
  0x10   : > { %s3604_s28 = smov (!%p488_p2), 112   ;;  %s3634_s2 = sld [smem:[#allocation4_spill]] (!%p488_p2)  ;;  %vm636_vm3 = vcmp.lt.s32.totalorder (!%p488_p2), %v2589_v23, 15  ;;  %vm664_vm4 = vcmp.lt.s32.totalorder (!%p488_p2), %v2589_v23, 1  ;;  %vm707_vm5 = vcmp.lt.s32.totalorder (!%p488_p2), %v2589_v23, 127  ;;  %vm735_vm6 = vcmp.lt.s32.totalorder (!%p488_p2), %v2589_v23, 113 }
  0x11   : > { %s3618_s1 = smov (!%p488_p2), 111   ;;  %s3635_s5 = sld [smem:[#allocation6_spill]] (!%p488_p2)  ;;  %vm763_vm7 = vcmp.lt.s32.totalorder (!%p488_p2), %v2589_v23, 112  ;;  %vm791_vm8 = vcmp.lt.s32.totalorder (!%p488_p2), %v2589_v23, 111 }
  0x12   : > { %s3636_s4 = sld [smem:[#allocation5_spill]] (!%p488_p2)  ;;  %s3639_s6 = sld [smem:[#allocation7_spill]] (!%p488_p2) }
  0x13   : > { %s3653_s25 = smov (!%p539_p3, %s2132_s25), 1 }
  0x14   : > { %s3603_s26 = sshll.u32 %s3653_s25, 5  ;;  %v2144_v8 = vld [vmem:[%s3633_s21 + $0x4] ss:$8 sm:$0x3] }
  0x15   : > { %s543_s0 = scalar_lea.vmem %s3632_s29, %s3603_s26  ;;  %v2504_v9 = vrot.slane %v2144_v8, %v2496_v6  ;;  %v2507_v10 = vrot.slane %v2144_v8, %v2498_v7  ;;  %v549_v24 = vld [vmem:[%s3633_s21] ss:$8 sm:$0x3]  ;;  %v2141_v39 = vld [vmem:[%s3633_s21 + $0x1] ss:$8 sm:$0x3] }
  0x16   : > { %v2468_v0 = vld [vmem:[%s543_s0 + $0x8] sm:$0xff]  ;;  %v2470_v1 = vld [vmem:[%s543_s0] sm:$0xff]  ;;  %v2476_v2 = vld [vmem:[%s543_s0 + $0x18] sm:$0xff]  ;;  %v2596_v27 = vrot.slane %v549_v24, %v2496_v6  ;;  %v2599_v28 = vrot.slane %v549_v24, %v2498_v7  ;;  %v2618_v44 = vrot.slane %v2141_v39, %v2498_v7  ;;  %v2621_v45 = vrot.slane %v2141_v39, %v2496_v6  ;;  %s3637_s26 = smov 113   ;;  %s3642_s29 = smov 1  }
  0x17   : > { %574 = vrot.lane.b32.xlu1 %v2468_v0, %s3616_s30  ;;  %570 = vrot.lane.b32.xlu0 %v2470_v1, %s3616_s30  ;;  %v2478_v3 = vld [vmem:[%s543_s0 + $0x10] sm:$0xff]  ;;  %v2515_v11 = vmul.f32 %v2504_v9, %v2468_v0  ;;  %v2519_v12 = vmul.f32 %v2504_v9, %v2476_v2  ;;  %v2523_v13 = vmul.f32 %v2507_v10, %v2470_v1  ;;  %v812_v17 = vld [vmem:[%s3634_s2 + $0x8] sm:$0xff]  ;;  %s3643_s0 = smov 127  }
  0x18   : > { %v2527_v14 = vmul.f32 %v2507_v10, %v2478_v3  ;;  %2149 = vmatprep.mubr.msk.f32.mxu0 %vm827_vm0, %v812_v17  ;;  %v2203_v18 = vpack.c.bf16 %v2476_v2, %v2468_v0  ;;  %v2205_v19 = vpack.c.bf16 %v2478_v3, %v2470_v1  ;;  %v913_v20 = vld [vmem:[%s3635_s5] sm:$0xff]  ;;  %v914_v21 = vld [vmem:[%s3635_s5 + $0x8] sm:$0xff] }
  0x19   : > { %v2183_v15 = vpack.c.bf16 %v2519_v12, %v2515_v11  ;;  %v2142_v56 = vld [vmem:[%s3633_s21 + $0x2] ss:$8 sm:$0x3]  ;;  %v2146_v12 = vld [vmem:[%s3633_s21 + $0x6] ss:$8 sm:$0x3] }
  0x1a   : > { %v2185_v16 = vpack.c.bf16 %v2527_v14, %v2523_v13  ;;  %v2640_v61 = vrot.slane %v2142_v56, %v2498_v7  ;;  %v2643_v62 = vrot.slane %v2142_v56, %v2496_v6 }
  0x1b   : > { %576 = vrot.lane.b32.xlu1 %v2476_v2, %s3616_s30  ;;  %572 = vrot.lane.b32.xlu0 %v2478_v3, %s3616_s30 }
  0x1f   : > { %602 = vrot.lane.b32.xlu1 %v2478_v3, %s3614_s18  ;;  %600 = vrot.lane.b32.xlu0 %v2470_v1, %s3614_s18 }
  0x23   : > { %606 = vrot.lane.b32.xlu1 %v2476_v2, %s3614_s18  ;;  %604 = vrot.lane.b32.xlu0 %v2468_v0, %s3614_s18 }
  0x27   : > { %630 = vrot.lane.b32.xlu1 %v2478_v3, %s3612_s19  ;;  %628 = vrot.lane.b32.xlu0 %v2470_v1, %s3612_s19 }
  0x2b   : > { %634 = vrot.lane.b32.xlu1 %v2476_v2, %s3612_s19  ;;  %632 = vrot.lane.b32.xlu0 %v2468_v0, %s3612_s19 }
  0x2f   : > { %658 = vrot.lane.b32.xlu1 %v2478_v3, %s3610_s22  ;;  %656 = vrot.lane.b32.xlu0 %v2470_v1, %s3610_s22 }
  0x33   : > { %662 = vrot.lane.b32.xlu1 %v2476_v2, %s3610_s22  ;;  %660 = vrot.lane.b32.xlu0 %v2468_v0, %s3610_s22 }
  0x37   : > { %701 = vrot.lane.b32.xlu1 %v2478_v3, %s3608_s23  ;;  %699 = vrot.lane.b32.xlu0 %v2470_v1, %s3608_s23 }
  0x3b   : > { %705 = vrot.lane.b32.xlu1 %v2476_v2, %s3608_s23  ;;  %703 = vrot.lane.b32.xlu0 %v2468_v0, %s3608_s23 }
  0x3f   : > { %729 = vrot.lane.b32.xlu1 %v2478_v3, %s3606_s27  ;;  %727 = vrot.lane.b32.xlu0 %v2470_v1, %s3606_s27 }
  0x43   : > { %733 = vrot.lane.b32.xlu1 %v2476_v2, %s3606_s27  ;;  %731 = vrot.lane.b32.xlu0 %v2468_v0, %s3606_s27  ;;  %s3638_s27 = smov 112  }
  0x47   : > { %757 = vrot.lane.b32.xlu1 %v2478_v3, %s3604_s28  ;;  %755 = vrot.lane.b32.xlu0 %v2470_v1, %s3604_s28 }
  0x4b   : > { %761 = vrot.lane.b32.xlu1 %v2476_v2, %s3604_s28  ;;  %759 = vrot.lane.b32.xlu0 %v2468_v0, %s3604_s28 }
  0x4f   : > { %785 = vrot.lane.b32.xlu1 %v2478_v3, %s3618_s1  ;;  %783 = vrot.lane.b32.xlu0 %v2470_v1, %s3618_s1 }
  0x53   : > { %789 = vrot.lane.b32.xlu1 %v2476_v2, %s3618_s1  ;;  %787 = vrot.lane.b32.xlu0 %v2468_v0, %s3618_s1  ;;  %v911_v0 = vld [vmem:[%s3636_s4] sm:$0xff]  ;;  %v912_v2 = vld [vmem:[%s3636_s4 + $0x8] sm:$0xff] }
  0x57   : > { %917 = vperm.xlu0 %2317, %v913_v20   ;;  %922 = vperm.xlu1 %2318, %v914_v21  }
  0x89   : > { %v575_v25 = vpop.permute.xlu1 %574  ;;  %v571_v26 = vpop.permute.xlu0 %570 }
  0x8a   : > { %v583_v29 = vsel %vm580_vm1, %v575_v25, %v571_v26  ;;  %v581_v30 = vsel %vm580_vm1, %v571_v26, %v575_v25 }
  0x8b   : > { %v597_v35 = vmul.f32 %v2596_v27, %v581_v30  ;;  %v596_v37 = vmul.f32 %v2599_v28, %v583_v29  ;;  %v2143_v29 = vld [vmem:[%s3633_s21 + $0x3] ss:$8 sm:$0x3] }
  0x8d   : > { %v577_v31 = vpop.permute.xlu1 %576  ;;  %v573_v32 = vpop.permute.xlu0 %572 }
  0x8e   : > { %v584_v33 = vsel %vm580_vm1, %v577_v31, %v573_v32  ;;  %v582_v34 = vsel %vm580_vm1, %v573_v32, %v577_v31 }
  0x8f   : > { %v599_v36 = vmul.f32 %v2596_v27, %v582_v34  ;;  %v598_v38 = vmul.f32 %v2599_v28, %v584_v33  ;;  %v2662_v34 = vrot.slane %v2143_v29, %v2498_v7 }
  0x91   : > { %v603_v40 = vpop.permute.xlu1 %602  ;;  %v601_v41 = vpop.permute.xlu0 %600  ;;  %v2167_v42 = vpack.c.bf16 %v599_v36, %v597_v35  ;;  %v2169_v43 = vpack.c.bf16 %v598_v38, %v596_v37  ;;  %v2665_v35 = vrot.slane %v2143_v29, %v2496_v6 }
  0x93   : > { %2168 = vmatprep.subr.bf16.mxu0 %v2167_v42 }
  0x94   : > { %2170 = vmatpush1.bf16.msra.mxu0 %v2169_v43 }
  0x95   : > { %v607_v46 = vpop.permute.xlu1 %606  ;;  %v605_v47 = vpop.permute.xlu0 %604 }
  0x96   : > { %v610_v48 = vsel %vm608_vm2, %v603_v40, %v607_v46  ;;  %v612_v49 = vsel %vm608_vm2, %v607_v46, %v603_v40  ;;  %v609_v50 = vsel %vm608_vm2, %v601_v41, %v605_v47  ;;  %v611_v51 = vsel %vm608_vm2, %v605_v47, %v601_v41 }
  0x97   : > { %v626_v52 = vmul.f32 %v2618_v44, %v612_v49  ;;  %v627_v53 = vmul.f32 %v2621_v45, %v610_v48  ;;  %v624_v54 = vmul.f32 %v2618_v44, %v611_v51  ;;  %v625_v55 = vmul.f32 %v2621_v45, %v609_v50  ;;  %v2145_v48 = vld [vmem:[%s3633_s21 + $0x5] ss:$8 sm:$0x3] }
  0x99   : > { %v631_v57 = vpop.permute.xlu1 %630  ;;  %v629_v58 = vpop.permute.xlu0 %628  ;;  %v2171_v59 = vpack.c.bf16 %v627_v53, %v625_v55  ;;  %v2173_v60 = vpack.c.bf16 %v626_v52, %v624_v54  ;;  %v2684_v53 = vrot.slane %v2145_v48, %v2498_v7  ;;  %v2687_v54 = vrot.slane %v2145_v48, %v2496_v6 }
  0x9b   : > { %2172 = vmatprep.subr.bf16.mxu0 %v2171_v59 }
  0x9c   : > { %2174 = vmatpush1.bf16.msra.mxu0 %v2173_v60 }
  0x9d   : > { %v635_v63 = vpop.permute.xlu1 %634  ;;  %v633_v4 = vpop.permute.xlu0 %632 }
  0x9e   : > { %v638_v5 = vsel %vm636_vm3, %v631_v57, %v635_v63  ;;  %v640_v8 = vsel %vm636_vm3, %v635_v63, %v631_v57  ;;  %v637_v17 = vsel %vm636_vm3, %v629_v58, %v633_v4  ;;  %v639_v20 = vsel %vm636_vm3, %v633_v4, %v629_v58 }
  0x9f   : > { %v654_v21 = vmul.f32 %v2640_v61, %v640_v8  ;;  %v655_v24 = vmul.f32 %v2643_v62, %v638_v5  ;;  %v652_v25 = vmul.f32 %v2640_v61, %v639_v20  ;;  %v653_v26 = vmul.f32 %v2643_v62, %v637_v17 }
  0xa1   : > { %v659_v30 = vpop.permute.xlu1 %658  ;;  %v657_v31 = vpop.permute.xlu0 %656  ;;  %v2175_v32 = vpack.c.bf16 %v655_v24, %v653_v26  ;;  %v2177_v33 = vpack.c.bf16 %v654_v21, %v652_v25  ;;  %v2712_v21 = vrot.slane %v2146_v12, %v2498_v7  ;;  %v2715_v24 = vrot.slane %v2146_v12, %v2496_v6 }
  0xa3   : > { %2176 = vmatprep.subr.bf16.mxu0 %v2175_v32 }
  0xa4   : > { %2178 = vmatpush1.bf16.msra.mxu0 %v2177_v33 }
  0xa5   : > { %v663_v36 = vpop.permute.xlu1 %662  ;;  %v661_v37 = vpop.permute.xlu0 %660 }
  0xa6   : > { %v666_v38 = vsel %vm664_vm4, %v659_v30, %v663_v36  ;;  %v668_v39 = vsel %vm664_vm4, %v663_v36, %v659_v30  ;;  %v665_v40 = vsel %vm664_vm4, %v657_v31, %v661_v37  ;;  %v667_v41 = vsel %vm664_vm4, %v661_v37, %v657_v31  ;;  %v2147_v36 = vld [vmem:[%s3633_s21 + $0x7] ss:$8 sm:$0x3] }
  0xa7   : > { %v682_v42 = vmul.f32 %v2662_v34, %v668_v39  ;;  %v683_v43 = vmul.f32 %v2665_v35, %v666_v38  ;;  %v680_v46 = vmul.f32 %v2662_v34, %v667_v41  ;;  %v681_v47 = vmul.f32 %v2665_v35, %v665_v40 }
  0xa8   : > { %v2734_v41 = vrot.slane %v2147_v36, %v2498_v7 }
  0xa9   : > { %v702_v49 = vpop.permute.xlu1 %701  ;;  %v700_v50 = vpop.permute.xlu0 %699  ;;  %v2179_v51 = vpack.c.bf16 %v683_v43, %v681_v47  ;;  %v2181_v52 = vpack.c.bf16 %v682_v42, %v680_v46  ;;  %v2737_v42 = vrot.slane %v2147_v36, %v2496_v6 }
  0xab   : > { %2180 = vmatprep.subr.bf16.mxu0 %v2179_v51 }
  0xac   : > { %2182 = vmatpush1.bf16.msra.mxu0 %v2181_v52 }
  0xad   : > { %v706_v55 = vpop.permute.xlu1 %705  ;;  %v704_v56 = vpop.permute.xlu0 %703  ;;  %2184 = vmatprep.subr.bf16.mxu0 %v2183_v15 }
  0xae   : > { %v709_v57 = vsel %vm707_vm5, %v702_v49, %v706_v55  ;;  %v711_v58 = vsel %vm707_vm5, %v706_v55, %v702_v49  ;;  %v708_v59 = vsel %vm707_vm5, %v700_v50, %v704_v56  ;;  %v710_v60 = vsel %vm707_vm5, %v704_v56, %v700_v50 }
  0xaf   : > { %v725_v63 = vmul.f32 %v2684_v53, %v709_v57  ;;  %v726_v4 = vmul.f32 %v2687_v54, %v711_v58  ;;  %v723_v5 = vmul.f32 %v2684_v53, %v708_v59  ;;  %v724_v11 = vmul.f32 %v2687_v54, %v710_v60  ;;  %v2148_v57 = vld [vmem:[%s3633_s21 + $0x10] ss:$8 sm:$0x3] }
  0xb0   : > { %2186 = vmatpush1.bf16.msra.mxu0 %v2185_v16 }
  0xb1   : > { %v730_v15 = vpop.permute.xlu1 %729  ;;  %v728_v8 = vpop.permute.xlu0 %727  ;;  %v2187_v17 = vpack.c.bf16 %v726_v4, %v724_v11  ;;  %v2189_v20 = vpack.c.bf16 %v725_v63, %v723_v5  ;;  %v2756_v4 = vrot.slane %v2148_v57, %v2498_v7  ;;  %v2759_v5 = vrot.slane %v2148_v57, %v2496_v6  ;;  %v1249_v57 = vld [vmem:[%s3593_s9] sm:$0xff] }
  0xb3   : > { %2188 = vmatprep.subr.bf16.mxu0 %v2187_v17 }
  0xb4   : > { %2190 = vmatpush1.bf16.msra.mxu0 %v2189_v20 }
  0xb5   : > { %v734_v13 = vpop.permute.xlu1 %733  ;;  %v732_v14 = vpop.permute.xlu0 %731 }
  0xb6   : > { %v737_v16 = vsel %vm735_vm6, %v730_v15, %v734_v13  ;;  %v739_v25 = vsel %vm735_vm6, %v734_v13, %v730_v15  ;;  %v736_v26 = vsel %vm735_vm6, %v728_v8, %v732_v14  ;;  %v738_v29 = vsel %vm735_vm6, %v732_v14, %v728_v8 }
  0xb7   : > { %v753_v30 = vmul.f32 %v2712_v21, %v737_v16  ;;  %v754_v31 = vmul.f32 %v2715_v24, %v739_v25  ;;  %v751_v32 = vmul.f32 %v2712_v21, %v736_v26  ;;  %v752_v33 = vmul.f32 %v2715_v24, %v738_v29  ;;  %v811_v26 = vld [vmem:[%s3634_s2] sm:$0xff]  ;;  %v814_v29 = vld [vmem:[%s3634_s2 + $0x18] sm:$0xff] }
  0xb9   : > { %v758_v37 = vpop.permute.xlu1 %757  ;;  %v756_v38 = vpop.permute.xlu0 %755  ;;  %v2191_v39 = vpack.c.bf16 %v754_v31, %v752_v33  ;;  %v2193_v40 = vpack.c.bf16 %v753_v30, %v751_v32  ;;  %v813_v30 = vld [vmem:[%s3634_s2 + $0x10] sm:$0xff]  ;;  %v3620_v31 = vmov 0.0  }
  0xbb   : > { %2192 = vmatprep.subr.bf16.mxu0 %v2191_v39 }
  0xbc   : > { %2194 = vmatpush1.bf16.msra.mxu0 %v2193_v40 }
  0xbd   : > { %v762_v43 = vpop.permute.xlu1 %761  ;;  %v760_v46 = vpop.permute.xlu0 %759 }
  0xbe   : > { %v765_v47 = vsel %vm763_vm7, %v758_v37, %v762_v43  ;;  %v767_v48 = vsel %vm763_vm7, %v762_v43, %v758_v37  ;;  %v764_v49 = vsel %vm763_vm7, %v756_v38, %v760_v46  ;;  %v766_v50 = vsel %vm763_vm7, %v760_v46, %v756_v38 }
  0xbf   : > { %v781_v51 = vmul.f32 %v2734_v41, %v765_v47  ;;  %v782_v52 = vmul.f32 %v2737_v42, %v767_v48  ;;  %v779_v55 = vmul.f32 %v2734_v41, %v764_v49  ;;  %v780_v56 = vmul.f32 %v2737_v42, %v766_v50 }
  0xc1   : > { %v786_v58 = vpop.permute.xlu1 %785  ;;  %v784_v59 = vpop.permute.xlu0 %783  ;;  %v2195_v60 = vpack.c.bf16 %v782_v52, %v780_v56  ;;  %v2197_v63 = vpack.c.bf16 %v781_v51, %v779_v55  ;;  %v1145_v52 = vld [vmem:[%s3639_s6 + $0x8] sm:$0xff]  ;;  %v1148_v55 = vld [vmem:[%s3591_s7] sm:$0xff] }
  0xc2   : > { %2153 = vmatprep.mubr.msk.f32.mxu1 %vm827_vm0, %v1145_v52  ;;  %v1149_v56 = vld [vmem:[%s3591_s7 + $0x8] sm:$0xff] }
  0xc3   : > { %2196 = vmatprep.subr.bf16.mxu0 %v2195_v60 }
  0xc4   : > { %2198 = vmatpush1.bf16.msra.mxu0 %v2197_v63 }
  0xc5   : > { %v790_v11 = vpop.permute.xlu1 %789  ;;  %v788_v12 = vpop.permute.xlu0 %787 }
  0xc6   : > { %v793_v15 = vsel %vm791_vm8, %v786_v58, %v790_v11  ;;  %v795_v8 = vsel %vm791_vm8, %v790_v11, %v786_v58  ;;  %v792_v17 = vsel %vm791_vm8, %v784_v59, %v788_v12  ;;  %v794_v20 = vsel %vm791_vm8, %v788_v12, %v784_v59  ;;  %v1250_v58 = vld [vmem:[%s3593_s9 + $0x8] sm:$0xff] }
  0xc7   : > { %v809_v7 = vmul.f32 %v2756_v4, %v793_v15  ;;  %v810_v6 = vmul.f32 %v2759_v5, %v795_v8  ;;  %v807_v13 = vmul.f32 %v2756_v4, %v792_v17  ;;  %v808_v14 = vmul.f32 %v2759_v5, %v794_v20 }
  0xc9   : > { %v2199_v16 = vpack.c.bf16 %v810_v6, %v808_v14  ;;  %v2201_v25 = vpack.c.bf16 %v809_v7, %v807_v13 }
  0xcb   : > { %2200 = vmatprep.subr.bf16.mxu0 %v2199_v16 }
  0xcc   : > { %2202 = vmatpush1.bf16.msra.mxu0 %v2201_v25 }
  0xcd   : > { %2204 = vmatprep.subr.bf16.mxu0 %v2203_v18 }
  0xcf   : > { %899 = vmatmul.mubr.f32.vlgmr.msra.gmra.mrb[0].mxu0 %v811_v26 }
  0xd0   : > { %2150 = vmatprep.mubr.msk.f32.mxu0 %vm827_vm0, %v814_v29  ;;  %2206 = vmatpush1.bf16.msra.mxu0 %v2205_v19 }
  0xd3   : > { %905 = vmatmul.mubr.f32.gmra.mrb[2].mxu0 %v813_v30 }
  0xd4   : > { %995 = vmatprep.mubr.f32.mxu0 %v3620_v31 }
  0xd6   : > { %v918_v32 = vpop.permute.xlu0 %917  ;;  %v923_v38 = vpop.permute.xlu1 %922 }
  0xd7   : > { %2151 = vmatmul.mubr.msk.f32.vlgmr.msra.gmra.mrb[4].mxu0 %vm827_vm0, %v911_v0 }
  0xd8   : > { %1001 = vmatprep.mubr.f32.mxu0 %v3620_v31 }
  0xdb   : > { %2152 = vmatmul.mubr.msk.f32.gmra.mrb[6].mxu0 %vm827_vm0, %v912_v2 }
  0xdc   : > { %1331 = vmatprep.mubr.f32.mxu0 %v3620_v31 }
 0x1a2   : > { %v2800_v1 = vpop.f32.mrb[0].mxu0 }
 0x1a3   : > { %v2802_v3 = vpop.f32.mrb[1].mxu0 }
 0x1a6   : > { %v2804_v18 = vpop.f32.mrb[2].mxu0 }
 0x1a7   : > { %v2806_v19 = vpop.f32.mrb[3].mxu0 }
 0x1aa   : > { %v997_v33 = vpop.f32.mrb[4].mxu0 }
 0x1ab   : > { %v998_v36 = vadd.f32 %v997_v33, %v918_v32  ;;  %v999_v37 = vpop.f32.mrb[5].mxu0 }
 0x1ac   : > { %v1000_v48 = vadd.f32 %v999_v37, %v918_v32 }
 0x1ad   : > { %v2808_v39 = vmax.f32 %v998_v36, 0.0 }
 0x1ae   : > { %v1003_v40 = vpop.f32.mrb[6].mxu0  ;;  %v2838_v49 = vmax.f32 %v1000_v48, 0.0 }
 0x1af   : > { %v1004_v43 = vadd.f32 %v1003_v40, %v923_v38  ;;  %v1005_v46 = vpop.f32.mrb[7].mxu0  ;;  %1012 = vrot.lane.b32.xlu1 %v2808_v39, %s3616_s30 }
 0x1b0   : > { %v1006_v50 = vadd.f32 %v1005_v46, %v923_v38 }
 0x1b1   : > { %v2812_v47 = vmax.f32 %v1004_v43, 0.0 }
 0x1b2   : > { %v2844_v51 = vmax.f32 %v1006_v50, 0.0 }
 0x1b3   : > { %1014 = vrot.lane.b32.xlu0 %v2812_v47, %s3616_s30  ;;  %1028 = vrot.lane.b32.xlu1 %v2808_v39, %s3614_s18 }
 0x1b7   : > { %1030 = vrot.lane.b32.xlu0 %v2812_v47, %s3614_s18  ;;  %1044 = vrot.lane.b32.xlu1 %v2808_v39, %s3612_s19 }
 0x1bb   : > { %1046 = vrot.lane.b32.xlu0 %v2812_v47, %s3612_s19  ;;  %1060 = vrot.lane.b32.xlu1 %v2808_v39, %s3610_s22 }
 0x1bf   : > { %1062 = vrot.lane.b32.xlu0 %v2812_v47, %s3610_s22  ;;  %1080 = vrot.lane.b32.xlu1 %v2808_v39, %s3608_s23 }
 0x1c3   : > { %1082 = vrot.lane.b32.xlu0 %v2812_v47, %s3608_s23  ;;  %1096 = vrot.lane.b32.xlu1 %v2808_v39, %s3637_s26 }
 0x1c7   : > { %1098 = vrot.lane.b32.xlu0 %v2812_v47, %s3637_s26  ;;  %1112 = vrot.lane.b32.xlu1 %v2808_v39, %s3638_s27 }
 0x1cb   : > { %1114 = vrot.lane.b32.xlu0 %v2812_v47, %s3638_s27  ;;  %1016 = vrot.lane.b32.xlu1 %v2838_v49, %s3616_s30 }
 0x1cf   : > { %1018 = vrot.lane.b32.xlu0 %v2844_v51, %s3616_s30  ;;  %1032 = vrot.lane.b32.xlu1 %v2838_v49, %s3614_s18 }
 0x1d3   : > { %1034 = vrot.lane.b32.xlu0 %v2844_v51, %s3614_s18  ;;  %1048 = vrot.lane.b32.xlu1 %v2838_v49, %s3612_s19  ;;  %s3651_s18 = sshll.u32 %s3653_s25, 5 }
 0x1d7   : > { %1050 = vrot.lane.b32.xlu0 %v2844_v51, %s3612_s19  ;;  %1064 = vrot.lane.b32.xlu1 %v2838_v49, %s3610_s22 }
 0x1db   : > { %1066 = vrot.lane.b32.xlu0 %v2844_v51, %s3610_s22  ;;  %1128 = vrot.lane.b32.xlu1 %v2808_v39, %s3618_s1  ;;  %s3640_s22 = smov 16  }
 0x1df   : > { %1130 = vrot.lane.b32.xlu0 %v2812_v47, %s3618_s1  ;;  %1084 = vrot.lane.b32.xlu1 %v2838_v49, %s3608_s23 }
 0x1e3   : > { %1086 = vrot.lane.b32.xlu0 %v2844_v51, %s3608_s23  ;;  %1100 = vrot.lane.b32.xlu1 %v2838_v49, %s3637_s26  ;;  %s3641_s23 = smov 15  }
 0x1e7   : > { %1102 = vrot.lane.b32.xlu0 %v2844_v51, %s3637_s26  ;;  %1116 = vrot.lane.b32.xlu1 %v2838_v49, %s3638_s27 }
 0x1eb   : > { %1118 = vrot.lane.b32.xlu0 %v2844_v51, %s3638_s27  ;;  %1132 = vrot.lane.b32.xlu1 %v2838_v49, %s3618_s1 }
 0x1ef   : > { %1134 = vrot.lane.b32.xlu0 %v2844_v51, %s3618_s1  ;;  %1152 = vperm.xlu1 %2318, %v1148_v55  }
 0x1f3   : > { %1157 = vperm.xlu0 %2317, %v1149_v56   ;;  %1253 = vperm.xlu1 %2318, %v1249_v57  }
 0x1f7   : > { %1258 = vperm.xlu0 %2317, %v1250_v58  }
 0x221   : > { %v1013_v59 = vpop.permute.xlu1 %1012 }
 0x225   : > { %v1015_v60 = vpop.permute.xlu0 %1014  ;;  %v1029_v63 = vpop.permute.xlu1 %1028 }
 0x229   : > { %v1031_v11 = vpop.permute.xlu0 %1030  ;;  %v1045_v12 = vpop.permute.xlu1 %1044 }
 0x22d   : > { %v1047_v15 = vpop.permute.xlu0 %1046  ;;  %v1061_v8 = vpop.permute.xlu1 %1060 }
 0x231   : > { %v1063_v17 = vpop.permute.xlu0 %1062  ;;  %v2896_v20 = vpop.permute.xlu1 %1080 }
 0x235   : > { %v2898_v7 = vpop.permute.xlu0 %1082  ;;  %v2900_v6 = vpop.permute.xlu1 %1096 }
 0x239   : > { %v2902_v13 = vpop.permute.xlu0 %1098  ;;  %v2904_v14 = vpop.permute.xlu1 %1112 }
 0x23d   : > { %v2906_v16 = vpop.permute.xlu0 %1114  ;;  %v1017_v25 = vpop.permute.xlu1 %1016 }
 0x23e   : > { %v1022_v26 = vsel %vm580_vm1, %v1017_v25, %v1013_v59  ;;  %v1020_v29 = vsel %vm580_vm1, %v1013_v59, %v1017_v25 }
 0x23f   : > { %v1025_v33 = vmul.f32 %v1020_v29, %v2596_v27  ;;  %v1024_v37 = vmul.f32 %v1022_v26, %v2599_v28 }
 0x241   : > { %v1019_v30 = vpop.permute.xlu0 %1018  ;;  %v1033_v0 = vpop.permute.xlu1 %1032 }
 0x242   : > { %v1023_v2 = vsel %vm580_vm1, %v1019_v30, %v1015_v60  ;;  %v1021_v32 = vsel %vm580_vm1, %v1015_v60, %v1019_v30  ;;  %v1036_v40 = vsel %vm608_vm2, %v1029_v63, %v1033_v0  ;;  %v1038_v43 = vsel %vm608_vm2, %v1033_v0, %v1029_v63 }
 0x243   : > { %v1027_v36 = vmul.f32 %v1021_v32, %v2596_v27  ;;  %v1026_v38 = vmul.f32 %v1023_v2, %v2599_v28  ;;  %v1040_v57 = vmul.f32 %v1038_v43, %v2618_v44  ;;  %v1041_v58 = vmul.f32 %v1036_v40, %v2621_v45 }
 0x245   : > { %v1035_v46 = vpop.permute.xlu0 %1034  ;;  %v1049_v48 = vpop.permute.xlu1 %1048  ;;  %v2207_v50 = vpack.c.bf16 %v1027_v36, %v1025_v33  ;;  %v2209_v52 = vpack.c.bf16 %v1026_v38, %v1024_v37 }
 0x246   : > { %v1037_v55 = vsel %vm608_vm2, %v1031_v11, %v1035_v46  ;;  %v1039_v56 = vsel %vm608_vm2, %v1035_v46, %v1031_v11  ;;  %v1052_v63 = vsel %vm636_vm3, %v1045_v12, %v1049_v48  ;;  %v1054_v25 = vsel %vm636_vm3, %v1049_v48, %v1045_v12 }
 0x247   : > { %v1042_v59 = vmul.f32 %v1039_v56, %v2618_v44  ;;  %v1043_v60 = vmul.f32 %v1037_v55, %v2621_v45  ;;  %2208 = vmatprep.subr.bf16.mxu1 %v2207_v50  ;;  %v1056_v32 = vmul.f32 %v1054_v25, %v2640_v61  ;;  %v1057_v33 = vmul.f32 %v1052_v63, %v2643_v62 }
 0x248   : > { %2210 = vmatpush1.bf16.msra.mxu1 %v2209_v52  ;;  %v1079_v52 = vmul.f32 %v2844_v51, %v2504_v9  ;;  %v1078_v25 = vmul.f32 %v2812_v47, %v2507_v10 }
 0x249   : > { %v1051_v26 = vpop.permute.xlu0 %1050  ;;  %v1065_v29 = vpop.permute.xlu1 %1064  ;;  %v2211_v30 = vpack.c.bf16 %v1043_v60, %v1041_v58  ;;  %v2213_v11 = vpack.c.bf16 %v1042_v59, %v1040_v57 }
 0x24a   : > { %v1053_v0 = vsel %vm636_vm3, %v1047_v15, %v1051_v26  ;;  %v1055_v2 = vsel %vm636_vm3, %v1051_v26, %v1047_v15  ;;  %v1068_v12 = vsel %vm664_vm4, %v1061_v8, %v1065_v29  ;;  %v1070_v38 = vsel %vm664_vm4, %v1065_v29, %v1061_v8 }
 0x24b   : > { %v1058_v36 = vmul.f32 %v1055_v2, %v2640_v61  ;;  %v1059_v37 = vmul.f32 %v1053_v0, %v2643_v62  ;;  %2212 = vmatprep.subr.bf16.mxu1 %v2211_v30  ;;  %v1072_v55 = vmul.f32 %v1070_v38, %v2662_v34  ;;  %v1073_v56 = vmul.f32 %v1068_v12, %v2665_v35 }
 0x24c   : > { %2214 = vmatpush1.bf16.msra.mxu1 %v2213_v11  ;;  %v1076_v11 = vmul.f32 %v2808_v39, %v2507_v10 }
 0x24d   : > { %v1067_v40 = vpop.permute.xlu0 %1066  ;;  %v2948_v43 = vpop.permute.xlu1 %1128  ;;  %v2215_v15 = vpack.c.bf16 %v1059_v37, %v1057_v33  ;;  %v2217_v46 = vpack.c.bf16 %v1058_v36, %v1056_v32 }
 0x24e   : > { %v1069_v48 = vsel %vm664_vm4, %v1063_v17, %v1067_v40  ;;  %v1071_v50 = vsel %vm664_vm4, %v1067_v40, %v1063_v17  ;;  %v1077_v17 = vmul.f32 %v2838_v49, %v2504_v9  ;;  %v2225_v36 = vpack.c.bf16 %v1078_v25, %v1076_v11 }
 0x24f   : > { %v1074_v8 = vmul.f32 %v1071_v50, %v2662_v34  ;;  %v1075_v57 = vmul.f32 %v1069_v48, %v2665_v35  ;;  %2216 = vmatprep.subr.bf16.mxu1 %v2215_v15 }
 0x250   : > { %2218 = vmatpush1.bf16.msra.mxu1 %v2217_v46  ;;  %v2223_v26 = vpack.c.bf16 %v1079_v52, %v1077_v17 }
 0x251   : > { %v1131_v58 = vpop.permute.xlu0 %1130  ;;  %v1085_v59 = vpop.permute.xlu1 %1084  ;;  %v2219_v60 = vpack.c.bf16 %v1075_v57, %v1073_v56  ;;  %v2221_v63 = vpack.c.bf16 %v1074_v8, %v1072_v55 }
 0x252   : > { %v1088_v29 = vsel %vm707_vm5, %v2896_v20, %v1085_v59  ;;  %v1090_v30 = vsel %vm707_vm5, %v1085_v59, %v2896_v20 }
 0x253   : > { %2220 = vmatprep.subr.bf16.mxu1 %v2219_v60  ;;  %v1092_v37 = vmul.f32 %v1088_v29, %v2684_v53  ;;  %v1093_v20 = vmul.f32 %v1090_v30, %v2687_v54 }
 0x254   : > { %2222 = vmatpush1.bf16.msra.mxu1 %v2221_v63 }
 0x255   : > { %v1087_v0 = vpop.permute.xlu0 %1086  ;;  %2224 = vmatprep.subr.bf16.mxu1 %v2223_v26  ;;  %v1101_v2 = vpop.permute.xlu1 %1100 }
 0x256   : > { %v1089_v32 = vsel %vm707_vm5, %v2898_v7, %v1087_v0  ;;  %v1091_v33 = vsel %vm707_vm5, %v1087_v0, %v2898_v7  ;;  %v1104_v40 = vsel %vm735_vm6, %v2900_v6, %v1101_v2  ;;  %v1106_v15 = vsel %vm735_vm6, %v1101_v2, %v2900_v6 }
 0x257   : > { %v1094_v12 = vmul.f32 %v1089_v32, %v2684_v53  ;;  %v1095_v38 = vmul.f32 %v1091_v33, %v2687_v54  ;;  %v1108_v56 = vmul.f32 %v1104_v40, %v2712_v21  ;;  %v1109_v8 = vmul.f32 %v1106_v15, %v2715_v24 }
 0x258   : > { %2226 = vmatpush1.bf16.msra.mxu1 %v2225_v36 }
 0x259   : > { %v1103_v46 = vpop.permute.xlu0 %1102  ;;  %v1117_v7 = vpop.permute.xlu1 %1116  ;;  %v2227_v48 = vpack.c.bf16 %v1095_v38, %v1093_v20  ;;  %v2229_v50 = vpack.c.bf16 %v1094_v12, %v1092_v37 }
 0x25a   : > { %v1105_v52 = vsel %vm735_vm6, %v2902_v13, %v1103_v46  ;;  %v1107_v55 = vsel %vm735_vm6, %v1103_v46, %v2902_v13  ;;  %v1120_v59 = vsel %vm763_vm7, %v2904_v14, %v1117_v7  ;;  %v1122_v60 = vsel %vm763_vm7, %v1117_v7, %v2904_v14  ;;  %v1144_v7 = vld [vmem:[%s3639_s6] sm:$0xff] }
 0x25b   : > { %v1110_v57 = vmul.f32 %v1105_v52, %v2712_v21  ;;  %v1111_v6 = vmul.f32 %v1107_v55, %v2715_v24  ;;  %2228 = vmatprep.subr.bf16.mxu1 %v2227_v48  ;;  %v1124_v30 = vmul.f32 %v1120_v59, %v2734_v41  ;;  %v1125_v11 = vmul.f32 %v1122_v60, %v2737_v42  ;;  %v1146_v48 = vld [vmem:[%s3639_s6 + $0x10] sm:$0xff] }
 0x25c   : > { %2230 = vmatpush1.bf16.msra.mxu1 %v2229_v50 }
 0x25d   : > { %v1119_v63 = vpop.permute.xlu0 %1118  ;;  %v1133_v13 = vpop.permute.xlu1 %1132  ;;  %v2231_v17 = vpack.c.bf16 %v1111_v6, %v1109_v8  ;;  %v2233_v25 = vpack.c.bf16 %v1110_v57, %v1108_v56 }
 0x25e   : > { %v1121_v26 = vsel %vm763_vm7, %v2906_v16, %v1119_v63  ;;  %v1123_v29 = vsel %vm763_vm7, %v1119_v63, %v2906_v16  ;;  %v1136_v2 = vsel %vm791_vm8, %v2948_v43, %v1133_v13  ;;  %v1138_v32 = vsel %vm791_vm8, %v1133_v13, %v2948_v43 }
 0x25f   : > { %v1126_v0 = vmul.f32 %v1121_v26, %v2734_v41  ;;  %v1127_v14 = vmul.f32 %v1123_v29, %v2737_v42  ;;  %2232 = vmatprep.subr.bf16.mxu1 %v2231_v17  ;;  %v1140_v12 = vmul.f32 %v1136_v2, %v2756_v4  ;;  %v1141_v38 = vmul.f32 %v1138_v32, %v2759_v5 }
 0x260   : > { %2234 = vmatpush1.bf16.msra.mxu1 %v2233_v25 }
 0x261   : > { %v1135_v33 = vpop.permute.xlu0 %1134  ;;  %v2235_v16 = vpack.c.bf16 %v1127_v14, %v1125_v11  ;;  %v2237_v36 = vpack.c.bf16 %v1126_v0, %v1124_v30  ;;  %v1247_v11 = vld [vmem:[%s3592_s8] sm:$0xff]  ;;  %v1248_v0 = vld [vmem:[%s3592_s8 + $0x8] sm:$0xff] }
 0x262   : > { %v1137_v37 = vsel %vm791_vm8, %v1131_v58, %v1135_v33  ;;  %v1139_v20 = vsel %vm791_vm8, %v1135_v33, %v1131_v58  ;;  %v1147_v58 = vld [vmem:[%s3639_s6 + $0x18] sm:$0xff]  ;;  %s3649_s6 = smov 17  }
 0x263   : > { %v1142_v40 = vmul.f32 %v1137_v37, %v2756_v4  ;;  %v1143_v15 = vmul.f32 %v1139_v20, %v2759_v5  ;;  %2236 = vmatprep.subr.bf16.mxu1 %v2235_v16 }
 0x264   : > { %2238 = vmatpush1.bf16.msra.mxu1 %v2237_v36 }
 0x265   : > { %v2239_v43 = vpack.c.bf16 %v1143_v15, %v1141_v38  ;;  %v2241_v46 = vpack.c.bf16 %v1142_v40, %v1140_v12 }
 0x267   : > { %2240 = vmatprep.subr.bf16.mxu1 %v2239_v43 }
 0x268   : > { %2242 = vmatpush1.bf16.msra.mxu1 %v2241_v46 }
 0x26b   : > { %1231 = vmatmul.mubr.f32.vlgmr.msra.gmra.mrb[0].mxu1 %v1144_v7 }
 0x26c   : > { %2154 = vmatprep.mubr.msk.f32.mxu1 %vm827_vm0, %v1147_v58 }
 0x26e   : > { %v1153_v55 = vpop.permute.xlu1 %1152 }
 0x26f   : > { %1237 = vmatmul.mubr.f32.gmra.mrb[2].mxu1 %v1146_v48 }
 0x272   : > { %v1158_v56 = vpop.permute.xlu0 %1157  ;;  %v1254_v14 = vpop.permute.xlu1 %1253 }
 0x276   : > { %v1259_v37 = vpop.permute.xlu0 %1258 }
 0x33e   : > { %v1232_v50 = vpop.f32.mrb[0].mxu1 }
 0x33f   : > { %v1234_v52 = vpop.f32.mrb[1].mxu1  ;;  %v3040_v6 = vadd.f32 %v1232_v50, %v1153_v55 }
 0x340   : > { %v3038_v8 = vadd.f32 %v1234_v52, %v1153_v55 }
 0x341   : > { %v3625_v26 = vmax.f32 %v3040_v6, 0.0 }
 0x342   : > { %v1238_v57 = vpop.f32.mrb[2].mxu1  ;;  %v3623_v17 = vmax.f32 %v3038_v8, 0.0 }
 0x343   : > { %v3042_v59 = vadd.f32 %v1238_v57, %v1158_v56  ;;  %v1240_v60 = vpop.f32.mrb[3].mxu1  ;;  %v1488_v57 = vld [vmem:[%s3595_s11] sm:$0xff] }
 0x344   : > { %v3044_v63 = vadd.f32 %v1240_v60, %v1158_v56  ;;  %v1485_v56 = vld [vmem:[%s3594_s10 + $0x8] sm:$0xff] }
 0x345   : > { %v3624_v13 = vmax.f32 %v3042_v59, 0.0  ;;  %2157 = vmatprep.mubr.msk.f32.mxu1 %vm827_vm0, %v1485_v56  ;;  %v1489_v60 = vld [vmem:[%s3595_s11 + $0x8] sm:$0xff] }
 0x346   : > { %v3622_v25 = vmax.f32 %v3044_v63, 0.0 }
 0x347   : > { %v2245_v30 = vpack.c.bf16 %v3624_v13, %v3625_v26 }
 0x348   : > { %v2243_v29 = vpack.c.bf16 %v3622_v25, %v3623_v17 }
 0x34a   : > { %2244 = vmatprep.subr.bf16.mxu0 %v2243_v29  ;;  %v1593_v29 = vld [vmem:[%s3597_s13] sm:$0xff] }
 0x34b   : > { %2246 = vmatpush1.bf16.msra.mxu0 %v2245_v30  ;;  %v1594_v30 = vld [vmem:[%s3597_s13 + $0x8] sm:$0xff] }
 0x34e   : > { %2155 = vmatmul.mubr.msk.f32.vlgmr.msra.gmra.mrb[8].mxu0 %vm827_vm0, %v1247_v11  ;;  %v815_v11 = vld [vmem:[%s3587_s3] sm:$0xff] }
 0x34f   : > { %1337 = vmatprep.mubr.f32.mxu0 %v3620_v31 }
 0x352   : > { %2156 = vmatmul.mubr.msk.f32.gmra.mrb[10].mxu0 %vm827_vm0, %v1248_v0  ;;  %v816_v0 = vld [vmem:[%s3587_s3 + $0x8] sm:$0xff] }
 0x353   : > { %1675 = vmatprep.mubr.f32.mxu0 %v3620_v31 }
 0x421   : > { %v1333_v2 = vpop.f32.mrb[8].mxu0 }
 0x422   : > { %v1334_v32 = vadd.f32 %v1333_v2, %v1254_v14  ;;  %v1335_v33 = vpop.f32.mrb[9].mxu0 }
 0x423   : > { %v1336_v16 = vadd.f32 %v1335_v33, %v1254_v14  ;;  %v3145_v14 = vld [vmem:[%s3598_s14] sm:$0xff] }
 0x424   : > { %v1344_v36 = vmax.f32 %v1334_v32, 0.0 }
 0x425   : > { %v1345_v20 = vmax.f32 %v1336_v16, 0.0  ;;  %v1339_v12 = vpop.f32.mrb[10].mxu0 }
 0x426   : > { %v1348_v38 = vadd.f32 %v1344_v36, %v2808_v39  ;;  %v1340_v40 = vadd.f32 %v1339_v12, %v1259_v37  ;;  %v1341_v15 = vpop.f32.mrb[11].mxu0 }
 0x427   : > { %v1342_v43 = vadd.f32 %v1341_v15, %v1259_v37  ;;  %v1349_v7 = vadd.f32 %v1345_v20, %v2838_v49 }
 0x428   : > { %v1346_v46 = vmax.f32 %v1340_v40, 0.0  ;;  %1352 = vrot.lane.b32.xlu1 %v1348_v38, %s3616_s30  ;;  %v3076_v52 = vmul.f32 %v1348_v38, %v2507_v10 }
 0x429   : > { %v1347_v58 = vmax.f32 %v1342_v43, 0.0  ;;  %v3082_v55 = vmul.f32 %v1349_v7, %v2504_v9 }
 0x42a   : > { %v1350_v48 = vadd.f32 %v1346_v46, %v2812_v47 }
 0x42b   : > { %v1351_v50 = vadd.f32 %v1347_v58, %v2844_v51 }
 0x42c   : > { %1354 = vrot.lane.b32.xlu0 %v1350_v48, %s3616_s30  ;;  %1368 = vrot.lane.b32.xlu1 %v1348_v38, %s3640_s22  ;;  %v3079_v39 = vmul.f32 %v1350_v48, %v2507_v10 }
 0x42d   : > { %v3085_v49 = vmul.f32 %v1351_v50, %v2504_v9 }
 0x42e   : > { %v2265_v47 = vpack.c.bf16 %v3079_v39, %v3076_v52 }
 0x42f   : > { %v2263_v51 = vpack.c.bf16 %v3085_v49, %v3082_v55 }
 0x430   : > { %1370 = vrot.lane.b32.xlu0 %v1350_v48, %s3640_s22  ;;  %1384 = vrot.lane.b32.xlu1 %v1348_v38, %s3641_s23 }
 0x434   : > { %1386 = vrot.lane.b32.xlu0 %v1350_v48, %s3641_s23  ;;  %1400 = vrot.lane.b32.xlu1 %v1348_v38, %s3642_s29 }
 0x438   : > { %1402 = vrot.lane.b32.xlu0 %v1350_v48, %s3642_s29  ;;  %1420 = vrot.lane.b32.xlu1 %v1348_v38, %s3643_s0 }
 0x43c   : > { %1422 = vrot.lane.b32.xlu0 %v1350_v48, %s3643_s0  ;;  %1436 = vrot.lane.b32.xlu1 %v1348_v38, %s3637_s26 }
 0x440   : > { %1438 = vrot.lane.b32.xlu0 %v1350_v48, %s3637_s26  ;;  %1452 = vrot.lane.b32.xlu1 %v1348_v38, %s3638_s27 }
 0x444   : > { %1454 = vrot.lane.b32.xlu0 %v1350_v48, %s3638_s27  ;;  %1356 = vrot.lane.b32.xlu1 %v1349_v7, %s3616_s30 }
 0x448   : > { %1358 = vrot.lane.b32.xlu0 %v1351_v50, %s3616_s30  ;;  %1372 = vrot.lane.b32.xlu1 %v1349_v7, %s3640_s22  ;;  %s548_s30 = scalar_lea.vmem %s3601_s17, %s3651_s18 }
 0x44c   : > { %1374 = vrot.lane.b32.xlu0 %v1351_v50, %s3640_s22  ;;  %1388 = vrot.lane.b32.xlu1 %v1349_v7, %s3641_s23 }
 0x450   : > { %1390 = vrot.lane.b32.xlu0 %v1351_v50, %s3641_s23  ;;  %1404 = vrot.lane.b32.xlu1 %v1349_v7, %s3642_s29 }
 0x454   : > { %1406 = vrot.lane.b32.xlu0 %v1351_v50, %s3642_s29  ;;  %1468 = vrot.lane.b32.xlu1 %v1348_v38, %s3618_s1 }
 0x458   : > { %1470 = vrot.lane.b32.xlu0 %v1350_v48, %s3618_s1  ;;  %1424 = vrot.lane.b32.xlu1 %v1349_v7, %s3643_s0 }
 0x45c   : > { %1426 = vrot.lane.b32.xlu0 %v1351_v50, %s3643_s0  ;;  %1440 = vrot.lane.b32.xlu1 %v1349_v7, %s3637_s26 }
 0x460   : > { %1442 = vrot.lane.b32.xlu0 %v1351_v50, %s3637_s26  ;;  %1456 = vrot.lane.b32.xlu1 %v1349_v7, %s3638_s27 }
 0x464   : > { %1458 = vrot.lane.b32.xlu0 %v1351_v50, %s3638_s27  ;;  %1472 = vrot.lane.b32.xlu1 %v1349_v7, %s3618_s1 }
 0x468   : > { %1474 = vrot.lane.b32.xlu0 %v1351_v50, %s3618_s1  ;;  %1492 = vperm.xlu1 %2318, %v1488_v57   ;;  %s3650_s1 = smov 111  }
 0x46c   : > { %1497 = vperm.xlu0 %2317, %v1489_v60   ;;  %1597 = vperm.xlu1 %2318, %v1593_v29  }
 0x470   : > { %1602 = vperm.xlu0 %2317, %v1594_v30   ;;  %819 = vperm.xlu1 %2318, %v815_v11  }
 0x474   : > { %824 = vperm.xlu0 %2317, %v816_v0   ;;  %1832 = vperm.xlu1 %2318, %v3145_v14  }
 0x49a   : > { %v1353_v2 = vpop.permute.xlu1 %1352 }
 0x49e   : > { %v1355_v32 = vpop.permute.xlu0 %1354  ;;  %v1369_v33 = vpop.permute.xlu1 %1368 }
 0x4a2   : > { %v1371_v16 = vpop.permute.xlu0 %1370  ;;  %v1385_v36 = vpop.permute.xlu1 %1384 }
 0x4a6   : > { %v1387_v37 = vpop.permute.xlu0 %1386  ;;  %v1401_v20 = vpop.permute.xlu1 %1400 }
 0x4aa   : > { %v1403_v12 = vpop.permute.xlu0 %1402  ;;  %v3148_v38 = vpop.permute.xlu1 %1420 }
 0x4ae   : > { %v3150_v40 = vpop.permute.xlu0 %1422  ;;  %v3152_v15 = vpop.permute.xlu1 %1436 }
 0x4b2   : > { %v3154_v43 = vpop.permute.xlu0 %1438  ;;  %v3156_v46 = vpop.permute.xlu1 %1452 }
 0x4b6   : > { %v3158_v7 = vpop.permute.xlu0 %1454  ;;  %v1357_v58 = vpop.permute.xlu1 %1356 }
 0x4b7   : > { %v1360_v48 = vsel %vm580_vm1, %v1353_v2, %v1357_v58  ;;  %v1362_v50 = vsel %vm580_vm1, %v1357_v58, %v1353_v2 }
 0x4b8   : > { %v1364_v30 = vmul.f32 %v1362_v50, %v2599_v28  ;;  %v1365_v11 = vmul.f32 %v1360_v48, %v2596_v27 }
 0x4ba   : > { %v1359_v56 = vpop.permute.xlu0 %1358  ;;  %v1373_v57 = vpop.permute.xlu1 %1372 }
 0x4bb   : > { %v1361_v60 = vsel %vm580_vm1, %v1355_v32, %v1359_v56  ;;  %v1363_v29 = vsel %vm580_vm1, %v1359_v56, %v1355_v32  ;;  %v1376_v25 = vsel %vm608_vm2, %v1369_v33, %v1373_v57  ;;  %v1378_v2 = vsel %vm608_vm2, %v1373_v57, %v1369_v33 }
 0x4bc   : > { %v1366_v0 = vmul.f32 %v1363_v29, %v2599_v28  ;;  %v1367_v31 = vmul.f32 %v1361_v60, %v2596_v27  ;;  %v1380_v50 = vmul.f32 %v1378_v2, %v2618_v44  ;;  %v1381_v56 = vmul.f32 %v1376_v25, %v2621_v45 }
 0x4be   : > { %v2249_v58 = vpack.c.bf16 %v1366_v0, %v1364_v30  ;;  %v1375_v17 = vpop.permute.xlu0 %1374  ;;  %v1389_v13 = vpop.permute.xlu1 %1388  ;;  %v2247_v26 = vpack.c.bf16 %v1367_v31, %v1365_v11 }
 0x4bf   : > { %v1377_v32 = vsel %vm608_vm2, %v1371_v16, %v1375_v17  ;;  %v1379_v48 = vsel %vm608_vm2, %v1375_v17, %v1371_v16  ;;  %v1392_v33 = vsel %vm636_vm3, %v1385_v36, %v1389_v13  ;;  %v1394_v31 = vsel %vm636_vm3, %v1389_v13, %v1385_v36 }
 0x4c0   : > { %v1382_v60 = vmul.f32 %v1379_v48, %v2618_v44  ;;  %v1383_v29 = vmul.f32 %v1377_v32, %v2621_v45  ;;  %2248 = vmatprep.subr.bf16.mxu1 %v2247_v26  ;;  %v1396_v0 = vmul.f32 %v1394_v31, %v2640_v61  ;;  %v1397_v26 = vmul.f32 %v1392_v33, %v2643_v62 }
 0x4c1   : > { %2250 = vmatpush1.bf16.msra.mxu1 %v2249_v58 }
 0x4c2   : > { %v2253_v57 = vpack.c.bf16 %v1382_v60, %v1380_v50  ;;  %v1391_v30 = vpop.permute.xlu0 %1390  ;;  %v1405_v11 = vpop.permute.xlu1 %1404  ;;  %v2251_v17 = vpack.c.bf16 %v1383_v29, %v1381_v56 }
 0x4c3   : > { %v1393_v16 = vsel %vm636_vm3, %v1387_v37, %v1391_v30  ;;  %v1395_v25 = vsel %vm636_vm3, %v1391_v30, %v1387_v37  ;;  %v1408_v13 = vsel %vm664_vm4, %v1401_v20, %v1405_v11  ;;  %v1410_v36 = vsel %vm664_vm4, %v1405_v11, %v1401_v20 }
 0x4c4   : > { %v1398_v2 = vmul.f32 %v1395_v25, %v2640_v61  ;;  %v1399_v32 = vmul.f32 %v1393_v16, %v2643_v62  ;;  %2252 = vmatprep.subr.bf16.mxu1 %v2251_v17  ;;  %v1412_v29 = vmul.f32 %v1410_v36, %v2662_v34  ;;  %v1413_v33 = vmul.f32 %v1408_v13, %v2665_v35 }
 0x4c5   : > { %2254 = vmatpush1.bf16.msra.mxu1 %v2253_v57 }
 0x4c6   : > { %v2257_v58 = vpack.c.bf16 %v1398_v2, %v1396_v0  ;;  %v1407_v48 = vpop.permute.xlu0 %1406  ;;  %v1469_v50 = vpop.permute.xlu1 %1468  ;;  %v2255_v37 = vpack.c.bf16 %v1399_v32, %v1397_v26 }
 0x4c7   : > { %v1409_v56 = vsel %vm664_vm4, %v1403_v12, %v1407_v48  ;;  %v1411_v60 = vsel %vm664_vm4, %v1407_v48, %v1403_v12 }
 0x4c8   : > { %v1414_v31 = vmul.f32 %v1411_v60, %v2662_v34  ;;  %v1415_v30 = vmul.f32 %v1409_v56, %v2665_v35  ;;  %2256 = vmatprep.subr.bf16.mxu1 %v2255_v37 }
 0x4c9   : > { %2258 = vmatpush1.bf16.msra.mxu1 %v2257_v58 }
 0x4ca   : > { %v2261_v20 = vpack.c.bf16 %v1414_v31, %v1412_v29  ;;  %v1471_v57 = vpop.permute.xlu0 %1470  ;;  %v1425_v11 = vpop.permute.xlu1 %1424  ;;  %v2259_v17 = vpack.c.bf16 %v1415_v30, %v1413_v33 }
 0x4cb   : > { %v1428_v16 = vsel %vm707_vm5, %v3148_v38, %v1425_v11  ;;  %v1430_v12 = vsel %vm707_vm5, %v1425_v11, %v3148_v38 }
 0x4cc   : > { %2260 = vmatprep.subr.bf16.mxu1 %v2259_v17  ;;  %v1432_v32 = vmul.f32 %v1428_v16, %v2684_v53  ;;  %v1433_v13 = vmul.f32 %v1430_v12, %v2687_v54 }
 0x4cd   : > { %2262 = vmatpush1.bf16.msra.mxu1 %v2261_v20 }
 0x4ce   : > { %v1427_v25 = vpop.permute.xlu0 %1426  ;;  %2264 = vmatprep.subr.bf16.mxu1 %v2263_v51  ;;  %v1441_v0 = vpop.permute.xlu1 %1440 }
 0x4cf   : > { %v1429_v26 = vsel %vm707_vm5, %v3150_v40, %v1427_v25  ;;  %v1431_v2 = vsel %vm707_vm5, %v1427_v25, %v3150_v40  ;;  %v1444_v55 = vsel %vm735_vm6, %v3152_v15, %v1441_v0  ;;  %v1446_v49 = vsel %vm735_vm6, %v1441_v0, %v3152_v15 }
 0x4d0   : > { %v1434_v38 = vmul.f32 %v1429_v26, %v2684_v53  ;;  %v1435_v36 = vmul.f32 %v1431_v2, %v2687_v54  ;;  %v1448_v60 = vmul.f32 %v1444_v55, %v2712_v21  ;;  %v1449_v15 = vmul.f32 %v1446_v49, %v2715_v24 }
 0x4d1   : > { %2266 = vmatpush1.bf16.msra.mxu1 %v2265_v47 }
 0x4d2   : > { %v2269_v51 = vpack.c.bf16 %v1434_v38, %v1432_v32  ;;  %v1443_v40 = vpop.permute.xlu0 %1442  ;;  %v1457_v58 = vpop.permute.xlu1 %1456  ;;  %v2267_v48 = vpack.c.bf16 %v1435_v36, %v1433_v13 }
 0x4d3   : > { %v1445_v37 = vsel %vm735_vm6, %v3154_v43, %v1443_v40  ;;  %v1447_v56 = vsel %vm735_vm6, %v1443_v40, %v3154_v43  ;;  %v1460_v39 = vsel %vm763_vm7, %v3156_v46, %v1457_v58  ;;  %v1462_v47 = vsel %vm763_vm7, %v1457_v58, %v3156_v46  ;;  %v1484_v40 = vld [vmem:[%s3594_s10] sm:$0xff]  ;;  %v1486_v58 = vld [vmem:[%s3594_s10 + $0x10] sm:$0xff] }
 0x4d4   : > { %v1450_v29 = vmul.f32 %v1445_v37, %v2712_v21  ;;  %v1451_v52 = vmul.f32 %v1447_v56, %v2715_v24  ;;  %2268 = vmatprep.subr.bf16.mxu1 %v2267_v48  ;;  %v1464_v17 = vmul.f32 %v1460_v39, %v2734_v41  ;;  %v1465_v16 = vmul.f32 %v1462_v47, %v2737_v42  ;;  %v1829_v37 = vld [vmem:[%s3598_s14 + $0x8] sm:$0xff] }
 0x4d5   : > { %2270 = vmatpush1.bf16.msra.mxu1 %v2269_v51  ;;  %v2354_v48 = vmov 1   ;;  %v2355_v56 = vmov 2   ;;  %v2360_v39 = vmov 7   ;;  %v2361_v47 = vmov 8  }
 0x4d6   : > { %v2273_v33 = vpack.c.bf16 %v1450_v29, %v1448_v60  ;;  %v1459_v43 = vpop.permute.xlu0 %1458  ;;  %v1473_v31 = vpop.permute.xlu1 %1472  ;;  %v2271_v30 = vpack.c.bf16 %v1451_v52, %v1449_v15  ;;  %2319 = vset.pattern.permute.xlu1 %v2354_v48  ;;  %2320 = vset.pattern.permute.xlu0 %v2354_v48  ;;  %v2356_v60 = vmov 3   ;;  %v2357_v15 = vmov 4  }
 0x4d7   : > { %v1461_v20 = vsel %vm763_vm7, %v3158_v7, %v1459_v43  ;;  %v1463_v11 = vsel %vm763_vm7, %v1459_v43, %v3158_v7  ;;  %v1476_v25 = vsel %vm791_vm8, %v1469_v50, %v1473_v31  ;;  %v1478_v0 = vsel %vm791_vm8, %v1473_v31, %v1469_v50  ;;  %1845 = vperm.xlu1 %2319, %v3145_v14  }
 0x4d8   : > { %v1466_v12 = vmul.f32 %v1461_v20, %v2734_v41  ;;  %v1467_v46 = vmul.f32 %v1463_v11, %v2737_v42  ;;  %2272 = vmatprep.subr.bf16.mxu1 %v2271_v30  ;;  %v1480_v38 = vmul.f32 %v1476_v25, %v2756_v4  ;;  %v1481_v36 = vmul.f32 %v1478_v0, %v2759_v5 }
 0x4d9   : > { %2274 = vmatpush1.bf16.msra.mxu1 %v2273_v33  ;;  %1849 = vperm.xlu0 %2320, %v1829_v37   ;;  %v2358_v29 = vmov 5   ;;  %v2359_v52 = vmov 6  }
 0x4da   : > { %v2277_v26 = vpack.c.bf16 %v1466_v12, %v1464_v17  ;;  %v1475_v2 = vpop.permute.xlu0 %1474  ;;  %v2275_v32 = vpack.c.bf16 %v1467_v46, %v1465_v16 }
 0x4db   : > { %v1477_v7 = vsel %vm791_vm8, %v1471_v57, %v1475_v2  ;;  %v1479_v13 = vsel %vm791_vm8, %v1475_v2, %v1471_v57  ;;  %v1487_v57 = vld [vmem:[%s3594_s10 + $0x18] sm:$0xff]  ;;  %2321 = vset.pattern.permute.xlu1 %v2355_v56 }
 0x4dc   : > { %v1482_v55 = vmul.f32 %v1477_v7, %v2756_v4  ;;  %v1483_v49 = vmul.f32 %v1479_v13, %v2759_v5  ;;  %2276 = vmatprep.subr.bf16.mxu1 %v2275_v32  ;;  %1861 = vperm.xlu1 %2321, %v3145_v14   ;;  %v3644_v32 = vmax.f32 %v3040_v6, 0.0  ;;  %v3646_v13 = vmax.f32 %v3038_v8, 0.0  ;;  %v1592_v8 = vld [vmem:[%s3596_s12 + $0x8] sm:$0xff] }
 0x4dd   : > { %2278 = vmatpush1.bf16.msra.mxu1 %v2277_v26  ;;  %2322 = vset.pattern.permute.xlu0 %v2356_v60  ;;  %v3648_v6 = vmov 0.0  }
 0x4de   : > { %v2281_v50 = vpack.c.bf16 %v1482_v55, %v1480_v38  ;;  %v2279_v51 = vpack.c.bf16 %v1483_v49, %v1481_v36  ;;  %1877 = vperm.xlu0 %2322, %v3145_v14   ;;  %v3647_v36 = vmax.f32 %v3044_v63, 0.0 }
 0x4e0   : > { %2280 = vmatprep.subr.bf16.mxu1 %v2279_v51  ;;  %1865 = vperm.xlu1 %2321, %v1829_v37   ;;  %v1591_v51 = vld [vmem:[%s3596_s12] sm:$0xff] }
 0x4e1   : > { %2282 = vmatpush1.bf16.msra.mxu1 %v2281_v50 }
 0x4e2   : > { %2325 = vset.pattern.permute.xlu0 %v2357_v15 }
 0x4e3   : > { %1897 = vperm.xlu0 %2325, %v1829_v37  }
 0x4e4   : > { %1571 = vmatmul.mubr.f32.vlgmr.msra.gmra.mrb[4].mxu1 %v1484_v40  ;;  %2323 = vset.pattern.permute.xlu1 %v2356_v60 }
 0x4e5   : > { %2158 = vmatprep.mubr.msk.f32.mxu1 %vm827_vm0, %v1487_v57  ;;  %1881 = vperm.xlu1 %2323, %v1829_v37  }
 0x4e7   : > { %2326 = vset.pattern.permute.xlu0 %v2358_v29  ;;  %v1493_v33 = vpop.permute.xlu1 %1492 }
 0x4e8   : > { %1577 = vmatmul.mubr.f32.gmra.mrb[6].mxu1 %v1486_v58  ;;  %1909 = vperm.xlu0 %2326, %v3145_v14  }
 0x4e9   : > { %2324 = vset.pattern.permute.xlu1 %v2357_v15 }
 0x4ea   : > { %1893 = vperm.xlu1 %2324, %v3145_v14  }
 0x4eb   : > { %v1498_v11 = vpop.permute.xlu0 %1497 }
 0x4ec   : > { %2329 = vset.pattern.permute.xlu0 %v2359_v52 }
 0x4ed   : > { %1929 = vperm.xlu0 %2329, %v1829_v37  }
 0x4ee   : > { %2327 = vset.pattern.permute.xlu1 %v2358_v29 }
 0x4ef   : > { %1913 = vperm.xlu1 %2327, %v1829_v37   ;;  %v1603_v58 = vpop.permute.xlu0 %1602 }
 0x4f1   : > { %2330 = vset.pattern.permute.xlu0 %v2360_v39 }
 0x4f2   : > { %1941 = vperm.xlu0 %2330, %v3145_v14  }
 0x4f3   : > { %2328 = vset.pattern.permute.xlu1 %v2359_v52 }
 0x4f4   : > { %1925 = vperm.xlu1 %2328, %v3145_v14  }
 0x4f6   : > { %2333 = vset.pattern.permute.xlu0 %v2361_v47 }
 0x4f7   : > { %1961 = vperm.xlu0 %2333, %v1829_v37  }
 0x4f8   : > { %2331 = vset.pattern.permute.xlu1 %v2360_v39 }
 0x4f9   : > { %1945 = vperm.xlu1 %2331, %v1829_v37  }
 0x4fb   : > { %2334 = vset.pattern.permute.xlu0 %v2352_v22 }
 0x4fc   : > { %1837 = vperm.xlu0 %2334, %v1829_v37   ;;  %v825_v37 = vpop.permute.xlu0 %824 }
 0x4fd   : > { %2332 = vset.pattern.permute.xlu1 %v2361_v47 }
 0x4fe   : > { %1957 = vperm.xlu1 %2332, %v3145_v14   ;;  %v3645_v14 = vmax.f32 %v3042_v59, 0.0  ;;  %v1598_v59 = vpop.permute.xlu1 %1597 }
 0x502   : > { %2335 = vset.pattern.permute.xlu1 %v2352_v22  ;;  %v820_v63 = vpop.permute.xlu1 %819 }
 0x506   : > { %v3315_v40 = vpop.permute.xlu1 %1832 }
 0x556   : > { %v3317_v57 = vpop.permute.xlu1 %1845 }
 0x558   : > { %v3323_v60 = vpop.permute.xlu0 %1849 }
 0x55b   : > { %v3319_v48 = vpop.permute.xlu1 %1861 }
 0x55f   : > { %v3321_v56 = vpop.permute.xlu1 %1865 }
 0x564   : > { %v3325_v29 = vpop.permute.xlu1 %1881 }
 0x5b7   : > { %v1572_v43 = vpop.f32.mrb[4].mxu1 }
 0x5b8   : > { %v1573_v31 = vadd.f32 %v1572_v43, %v1493_v33  ;;  %v1574_v30 = vpop.f32.mrb[5].mxu1 }
 0x5b9   : > { %v1575_v20 = vadd.f32 %v1574_v30, %v1493_v33  ;;  %v901_v33 = vadd.f32 %v2800_v1, %v820_v63 }
 0x5ba   : > { %v1583_v16 = vmax.f32 %v1573_v31, 0.0  ;;  %v903_v31 = vadd.f32 %v2802_v3, %v820_v63  ;;  %v909_v3 = vadd.f32 %v2806_v19, %v825_v37 }
 0x5bb   : > { %v1578_v17 = vpop.f32.mrb[6].mxu1  ;;  %v1584_v25 = vmax.f32 %v1575_v20, 0.0 }
 0x5bc   : > { %v1579_v12 = vadd.f32 %v1578_v17, %v1498_v11  ;;  %v1580_v46 = vpop.f32.mrb[7].mxu1  ;;  %v1587_v7 = vadd.f32 %v1583_v16, %v3644_v32 }
 0x5bd   : > { %v1581_v0 = vadd.f32 %v1580_v46, %v1498_v11  ;;  %v1588_v38 = vadd.f32 %v1584_v25, %v3646_v13  ;;  %v3329_v11 = vpop.permute.xlu0 %1877 }
 0x5be   : > { %v1585_v26 = vmax.f32 %v1579_v12, 0.0 }
 0x5bf   : > { %v1586_v2 = vmax.f32 %v1581_v0, 0.0  ;;  %v1894_v0 = vpop.permute.xlu1 %1893 }
 0x5c0   : > { %v1589_v22 = vadd.f32 %v1585_v26, %v3645_v14  ;;  %v907_v26 = vadd.f32 %v2804_v18, %v825_v37 }
 0x5c1   : > { %v1590_v55 = vadd.f32 %v1586_v2, %v3647_v36  ;;  %v3343_v18 = vpop.permute.xlu0 %1897 }
 0x5c2   : > { %v2285_v49 = vpack.c.bf16 %v1589_v22, %v1587_v7 }
 0x5c3   : > { %v2283_v50 = vpack.c.bf16 %v1590_v55, %v1588_v38  ;;  %v1973_v55 = vld [vmem:[%s3599_s15 + $0x8] sm:$0xff] }
 0x5c5   : > { %2284 = vmatprep.subr.bf16.mxu0 %v2283_v50 }
 0x5c6   : > { %2286 = vmatpush1.bf16.msra.mxu0 %v2285_v49  ;;  %v3393_v49 = vpop.permute.xlu0 %1909 }
 0x5c9   : > { %2159 = vmatmul.mubr.msk.f32.vlgmr.msra.gmra.mrb[12].mxu0 %vm827_vm0, %v1591_v51  ;;  %v3397_v51 = vpop.permute.xlu1 %1913 }
 0x5ca   : > { %1681 = vmatprep.mubr.f32.mxu0 %v3648_v6  ;;  %v3395_v50 = vpop.permute.xlu0 %1929 }
 0x5cd   : > { %2160 = vmatmul.mubr.msk.f32.gmra.mrb[14].mxu0 %vm827_vm0, %v1592_v8 }
 0x5ce   : > { %2060 = vmatprep.mubr.f32.mxu0 %v3648_v6  ;;  %v3399_v8 = vpop.permute.xlu0 %1941 }
 0x5d2   : > { %v3403_v63 = vpop.permute.xlu0 %1961 }
 0x5d6   : > { %v3407_v37 = vpop.permute.xlu0 %1837 }
 0x69c   : > { %v1677_v15 = vpop.f32.mrb[12].mxu0 }
 0x69d   : > { %v1678_v52 = vadd.f32 %v1677_v15, %v1598_v59  ;;  %v1679_v39 = vpop.f32.mrb[13].mxu0 }
 0x69e   : > { %v1680_v47 = vadd.f32 %v1679_v39, %v1598_v59  ;;  %v3401_v59 = vpop.permute.xlu1 %1925 }
 0x69f   : > { %v1688_v43 = vmax.f32 %v1678_v52, 0.0 }
 0x6a0   : > { %v1689_v30 = vmax.f32 %v1680_v47, 0.0  ;;  %v1683_v20 = vpop.f32.mrb[14].mxu0 }
 0x6a1   : > { %v1692_v17 = vadd.f32 %v1688_v43, %v901_v33  ;;  %v1684_v16 = vadd.f32 %v1683_v20, %v1603_v58  ;;  %v1685_v12 = vpop.f32.mrb[15].mxu0 }
 0x6a2   : > { %v1693_v46 = vadd.f32 %v1689_v30, %v903_v31  ;;  %v1686_v25 = vadd.f32 %v1685_v12, %v1603_v58  ;;  %v3405_v58 = vpop.permute.xlu1 %1945 }
 0x6a3   : > { %v1690_v2 = vmax.f32 %v1684_v16, 0.0  ;;  %1728 = vrot.lane.b32.xlu1 %v1692_v17, %s3641_s23  ;;  %1696 = vrot.lane.b32.xlu0 %v1692_v17, %s3649_s6  ;;  %v1760_v1 = vmul.f32 %v1692_v17, %v2507_v10 }
 0x6a4   : > { %v1691_v32 = vmax.f32 %v1686_v25, 0.0  ;;  %v1761_v7 = vmul.f32 %v1693_v46, %v2504_v9 }
 0x6a5   : > { %v1694_v14 = vadd.f32 %v1690_v2, %v907_v26  ;;  %v3337_v22 = vmul.f32 %v1894_v0, %v1760_v1 }
 0x6a6   : > { %v3339_v13 = vadd.f32 %v1691_v32, %v909_v3  ;;  %v3341_v38 = vmul.f32 %v1894_v0, %v1761_v7  ;;  %v3409_v15 = vpop.permute.xlu1 %1957 }
 0x6a7   : > { %1744 = vrot.lane.b32.xlu1 %v1692_v17, %s3642_s29  ;;  %1712 = vrot.lane.b32.xlu0 %v1692_v17, %s3640_s22  ;;  %v1762_v36 = vmul.f32 %v1694_v14, %v2507_v10  ;;  %v1972_v10 = vld [vmem:[%s3599_s15] sm:$0xff] }
 0x6a9   : > { %v3349_v19 = vmul.f32 %v3343_v18, %v1762_v36 }
 0x6ab   : > { %1764 = vrot.lane.b32.xlu1 %v1692_v17, %s3643_s0  ;;  %1812 = vrot.lane.b32.xlu0 %v1692_v17, %s3650_s1 }
 0x6af   : > { %1780 = vrot.lane.b32.xlu1 %v1692_v17, %s3637_s26  ;;  %1700 = vrot.lane.b32.xlu0 %v1693_v46, %s3649_s6 }
 0x6b3   : > { %1796 = vrot.lane.b32.xlu1 %v1692_v17, %s3638_s27  ;;  %1716 = vrot.lane.b32.xlu0 %v1693_v46, %s3640_s22 }
 0x6b7   : > { %1732 = vrot.lane.b32.xlu1 %v1693_v46, %s3641_s23  ;;  %1748 = vrot.lane.b32.xlu0 %v1693_v46, %s3642_s29 }
 0x6bb   : > { %1784 = vrot.lane.b32.xlu1 %v1693_v46, %s3637_s26  ;;  %1768 = vrot.lane.b32.xlu0 %v1693_v46, %s3643_s0 }
 0x6bf   : > { %1698 = vrot.lane.b32.xlu1 %v1694_v14, %s3649_s6  ;;  %1800 = vrot.lane.b32.xlu0 %v1693_v46, %s3638_s27 }
 0x6c3   : > { %1714 = vrot.lane.b32.xlu1 %v1694_v14, %s3640_s22  ;;  %1730 = vrot.lane.b32.xlu0 %v1694_v14, %s3641_s23 }
 0x6c7   : > { %1746 = vrot.lane.b32.xlu1 %v1694_v14, %s3642_s29  ;;  %1782 = vrot.lane.b32.xlu0 %v1694_v14, %s3637_s26 }
 0x6cb   : > { %1766 = vrot.lane.b32.xlu1 %v1694_v14, %s3643_s0  ;;  %1734 = vrot.lane.b32.xlu0 %v3339_v13, %s3641_s23 }
 0x6cf   : > { %1798 = vrot.lane.b32.xlu1 %v1694_v14, %s3638_s27  ;;  %1816 = vrot.lane.b32.xlu0 %v1693_v46, %s3650_s1 }
 0x6d3   : > { %1814 = vrot.lane.b32.xlu1 %v1694_v14, %s3650_s1  ;;  %1786 = vrot.lane.b32.xlu0 %v3339_v13, %s3637_s26 }
 0x6d7   : > { %1702 = vrot.lane.b32.xlu1 %v3339_v13, %s3649_s6  ;;  %1976 = vperm.xlu0 %2334, %v1972_v10  }
 0x6db   : > { %1718 = vrot.lane.b32.xlu1 %v3339_v13, %s3640_s22 }
 0x6df   : > { %1750 = vrot.lane.b32.xlu1 %v3339_v13, %s3642_s29 }
 0x6e3   : > { %1770 = vrot.lane.b32.xlu1 %v3339_v13, %s3643_s0 }
 0x6e7   : > { %1802 = vrot.lane.b32.xlu1 %v3339_v13, %s3638_s27 }
 0x6eb   : > { %1818 = vrot.lane.b32.xlu1 %v3339_v13, %s3650_s1 }
 0x6ef   : > { %1981 = vperm.xlu1 %2335, %v1973_v55  }
 0x715   : > { %v1729_v52 = vpop.permute.xlu1 %1728  ;;  %v1697_v39 = vpop.permute.xlu0 %1696 }
 0x719   : > { %v1745_v47 = vpop.permute.xlu1 %1744  ;;  %v1713_v33 = vpop.permute.xlu0 %1712 }
 0x71d   : > { %v1765_v43 = vpop.permute.xlu1 %1764  ;;  %v3411_v31 = vpop.permute.xlu0 %1812 }
 0x721   : > { %v1781_v30 = vpop.permute.xlu1 %1780  ;;  %v1701_v20 = vpop.permute.xlu0 %1700 }
 0x722   : > { %v1704_v17 = vsel %vm580_vm1, %v1697_v39, %v1701_v20  ;;  %v1706_v16 = vsel %vm580_vm1, %v1701_v20, %v1697_v39 }
 0x723   : > { %v1708_v26 = vmul.f32 %v1706_v16, %v2599_v28  ;;  %v1709_v2 = vmul.f32 %v1704_v17, %v2596_v27 }
 0x725   : > { %v1797_v12 = vpop.permute.xlu1 %1796  ;;  %v1717_v46 = vpop.permute.xlu0 %1716  ;;  %v1840_v20 = vmul.f32 %v3315_v40, %v1708_v26  ;;  %v1841_v17 = vmul.f32 %v3315_v40, %v1709_v2 }
 0x726   : > { %v1720_v25 = vsel %vm608_vm2, %v1713_v33, %v1717_v46  ;;  %v1722_v0 = vsel %vm608_vm2, %v1717_v46, %v1713_v33 }
 0x727   : > { %v1724_v1 = vmul.f32 %v1722_v0, %v2618_v44  ;;  %v1725_v3 = vmul.f32 %v1720_v25, %v2621_v45 }
 0x729   : > { %v1852_v32 = vmul.f32 %v3317_v57, %v1724_v1  ;;  %v1853_v7 = vmul.f32 %v3317_v57, %v1725_v3  ;;  %v1733_v14 = vpop.permute.xlu1 %1732  ;;  %v1749_v36 = vpop.permute.xlu0 %1748 }
 0x72a   : > { %v1736_v10 = vsel %vm636_vm3, %v1729_v52, %v1733_v14  ;;  %v1738_v55 = vsel %vm636_vm3, %v1733_v14, %v1729_v52  ;;  %v1752_v39 = vsel %vm664_vm4, %v1745_v47, %v1749_v36  ;;  %v1754_v33 = vsel %vm664_vm4, %v1749_v36, %v1745_v47 }
 0x72b   : > { %v1740_v57 = vmul.f32 %v1738_v55, %v2640_v61  ;;  %v1741_v16 = vmul.f32 %v1736_v10, %v2643_v62  ;;  %v1756_v46 = vmul.f32 %v1754_v33, %v2662_v34  ;;  %v1757_v25 = vmul.f32 %v1752_v39, %v2665_v35 }
 0x72c   : > { %v1856_v0 = vadd.f32 %v1852_v32, %v1840_v20  ;;  %v1857_v52 = vadd.f32 %v1853_v7, %v1841_v17 }
 0x72d   : > { %v1868_v1 = vmul.f32 %v3319_v48, %v1740_v57  ;;  %v1869_v3 = vmul.f32 %v3319_v48, %v1741_v16  ;;  %v1785_v14 = vpop.permute.xlu1 %1784  ;;  %v1769_v47 = vpop.permute.xlu0 %1768  ;;  %v1884_v10 = vmul.f32 %v3329_v11, %v1756_v46  ;;  %v1885_v55 = vmul.f32 %v3329_v11, %v1757_v25 }
 0x72e   : > { %v1788_v26 = vsel %vm735_vm6, %v1781_v30, %v1785_v14  ;;  %v1790_v40 = vsel %vm735_vm6, %v1785_v14, %v1781_v30  ;;  %v1772_v32 = vsel %vm707_vm5, %v1765_v43, %v1769_v47  ;;  %v1774_v48 = vsel %vm707_vm5, %v1769_v47, %v1765_v43 }
 0x72f   : > { %v1872_v2 = vadd.f32 %v1868_v1, %v1856_v0  ;;  %v1873_v36 = vadd.f32 %v1869_v3, %v1857_v52  ;;  %v1792_v33 = vmul.f32 %v1788_v26, %v2712_v21  ;;  %v1793_v20 = vmul.f32 %v1790_v40, %v2715_v24 }
 0x730   : > { %v1776_v57 = vmul.f32 %v1772_v32, %v2684_v53  ;;  %v1777_v16 = vmul.f32 %v1774_v48, %v2687_v54 }
 0x731   : > { %v1888_v7 = vadd.f32 %v1884_v10, %v1872_v2  ;;  %v1889_v39 = vadd.f32 %v1885_v55, %v1873_v36  ;;  %v1699_v17 = vpop.permute.xlu1 %1698  ;;  %v1801_v30 = vpop.permute.xlu0 %1800  ;;  %v1932_v26 = vmul.f32 %v3401_v59, %v1792_v33  ;;  %v1933_v40 = vmul.f32 %v3401_v59, %v1793_v20 }
 0x732   : > { %v1804_v11 = vsel %vm763_vm7, %v1797_v12, %v1801_v30  ;;  %v1806_v46 = vsel %vm763_vm7, %v1801_v30, %v1797_v12  ;;  %v1916_v0 = vmul.f32 %v3393_v49, %v1776_v57  ;;  %v1917_v52 = vmul.f32 %v3393_v49, %v1777_v16 }
 0x733   : > { %v1905_v43 = vadd.f32 %v3341_v38, %v1889_v39  ;;  %v1904_v25 = vadd.f32 %v3337_v22, %v1888_v7  ;;  %v1808_v1 = vmul.f32 %v1804_v11, %v2734_v41  ;;  %v1809_v3 = vmul.f32 %v1806_v46, %v2737_v42 }
 0x735   : > { %v1715_v14 = vpop.permute.xlu1 %1714  ;;  %v1731_v47 = vpop.permute.xlu0 %1730  ;;  %v1920_v2 = vadd.f32 %v1916_v0, %v1904_v25  ;;  %v1921_v12 = vadd.f32 %v1917_v52, %v1905_v43  ;;  %v1948_v38 = vmul.f32 %v3399_v8, %v1808_v1  ;;  %v1949_v22 = vmul.f32 %v3399_v8, %v1809_v3 }
 0x737   : > { %v1937_v36 = vadd.f32 %v1933_v40, %v1921_v12  ;;  %v1936_v10 = vadd.f32 %v1932_v26, %v1920_v2 }
 0x739   : > { %v1747_v55 = vpop.permute.xlu1 %1746  ;;  %v3471_v49 = vpop.permute.xlu0 %1782  ;;  %v1953_v32 = vadd.f32 %v1949_v22, %v1937_v36  ;;  %v1952_v48 = vadd.f32 %v1948_v38, %v1936_v10 }
 0x73d   : > { %v1767_v7 = vpop.permute.xlu1 %1766  ;;  %v1735_v39 = vpop.permute.xlu0 %1734 }
 0x73e   : > { %v1739_v1 = vsel %vm636_vm3, %v1735_v39, %v1731_v47  ;;  %v1737_v3 = vsel %vm636_vm3, %v1731_v47, %v1735_v39 }
 0x73f   : > { %v1742_v2 = vmul.f32 %v1739_v1, %v2640_v61  ;;  %v1743_v47 = vmul.f32 %v1737_v3, %v2643_v62 }
 0x741   : > { %v3473_v30 = vpop.permute.xlu1 %1798  ;;  %v1817_v33 = vpop.permute.xlu0 %1816 }
 0x742   : > { %v1820_v59 = vsel %vm791_vm8, %v3411_v31, %v1817_v33  ;;  %v1822_v8 = vsel %vm791_vm8, %v1817_v33, %v3411_v31 }
 0x743   : > { %v1824_v20 = vmul.f32 %v1820_v59, %v2756_v4  ;;  %v1825_v57 = vmul.f32 %v1822_v8, %v2759_v5 }
 0x745   : > { %v3483_v16 = vpop.permute.xlu1 %1814  ;;  %v1964_v11 = vmul.f32 %v3409_v15, %v1824_v20  ;;  %v1965_v46 = vmul.f32 %v3409_v15, %v1825_v57 }
 0x747   : > { %v3487_v43 = vadd.f32 %v1965_v46, %v1953_v32  ;;  %v3489_v25 = vadd.f32 %v1964_v11, %v1952_v48  ;;  %v1870_v48 = vmul.f32 %v3321_v56, %v1742_v2 }
 0x749   : > { %v1703_v0 = vpop.permute.xlu1 %1702 }
 0x74a   : > { %v1705_v52 = vsel %vm580_vm1, %v1699_v17, %v1703_v0  ;;  %v1707_v31 = vsel %vm580_vm1, %v1703_v0, %v1699_v17  ;;  %v1787_v17 = vpop.permute.xlu0 %1786 }
 0x74b   : > { %v1710_v26 = vmul.f32 %v1707_v31, %v2599_v28  ;;  %v1711_v15 = vmul.f32 %v1705_v52, %v2596_v27 }
 0x74d   : > { %v1719_v40 = vpop.permute.xlu1 %1718  ;;  %v1842_v28 = vmul.f32 %v3407_v37, %v1710_v26  ;;  %v1843_v27 = vmul.f32 %v3407_v37, %v1711_v15 }
 0x74e   : > { %v1721_v12 = vsel %vm608_vm2, %v1715_v14, %v1719_v40  ;;  %v1723_v38 = vsel %vm608_vm2, %v1719_v40, %v1715_v14  ;;  %v1789_v14 = vsel %vm735_vm6, %v3471_v49, %v1787_v17  ;;  %v1791_v40 = vsel %vm735_vm6, %v1787_v17, %v3471_v49 }
 0x74f   : > { %v1726_v22 = vmul.f32 %v1723_v38, %v2618_v44  ;;  %v1727_v36 = vmul.f32 %v1721_v12, %v2621_v45  ;;  %v1794_v57 = vmul.f32 %v1789_v14, %v2712_v21 }
 0x751   : > { %v1854_v10 = vmul.f32 %v3323_v60, %v1726_v22  ;;  %v1855_v61 = vmul.f32 %v3323_v60, %v1727_v36  ;;  %v1751_v32 = vpop.permute.xlu1 %1750  ;;  %v1871_v60 = vmul.f32 %v3321_v56, %v1743_v47  ;;  %v1934_v1 = vmul.f32 %v3395_v50, %v1794_v57 }
 0x752   : > { %v1753_v44 = vsel %vm664_vm4, %v1747_v55, %v1751_v32  ;;  %v1755_v45 = vsel %vm664_vm4, %v1751_v32, %v1747_v55 }
 0x753   : > { %v1858_v62 = vadd.f32 %v1854_v10, %v1842_v28  ;;  %v1859_v39 = vadd.f32 %v1855_v61, %v1843_v27  ;;  %v1758_v37 = vmul.f32 %v1755_v45, %v2662_v34  ;;  %v1759_v33 = vmul.f32 %v1753_v44, %v2665_v35 }
 0x754   : > { %v1763_v35 = vmul.f32 %v3339_v13, %v2504_v9 }
 0x755   : > { %v1874_v59 = vadd.f32 %v1870_v48, %v1858_v62  ;;  %v1886_v8 = vmul.f32 %v3325_v29, %v1758_v37  ;;  %v1771_v20 = vpop.permute.xlu1 %1770  ;;  %v1875_v46 = vadd.f32 %v1871_v60, %v1859_v39  ;;  %v1887_v55 = vmul.f32 %v3325_v29, %v1759_v33 }
 0x756   : > { %v1773_v11 = vsel %vm707_vm5, %v1767_v7, %v1771_v20  ;;  %v1775_v34 = vsel %vm707_vm5, %v1771_v20, %v1767_v7  ;;  %v1903_v15 = vmul.f32 %v3343_v18, %v1763_v35  ;;  %v1795_v18 = vmul.f32 %v1791_v40, %v2715_v24  ;;  %v1977_v61 = vpop.permute.xlu0 %1976 }
 0x757   : > { %v1890_v0 = vadd.f32 %v1886_v8, %v1874_v59  ;;  %v1778_v52 = vmul.f32 %v1773_v11, %v2684_v53  ;;  %v1891_v3 = vadd.f32 %v1887_v55, %v1875_v46  ;;  %v1779_v53 = vmul.f32 %v1775_v34, %v2687_v54 }
 0x758   : > { %v1984_v23 = vadd.f32 %v1977_v61, %v3489_v25 }
 0x759   : > { %v1906_v56 = vadd.f32 %v3349_v19, %v1890_v0  ;;  %v1918_v31 = vmul.f32 %v3397_v51, %v1778_v52  ;;  %v1803_v21 = vpop.permute.xlu1 %1802  ;;  %v1907_v12 = vadd.f32 %v1903_v15, %v1891_v3  ;;  %v1919_v54 = vmul.f32 %v3397_v51, %v1779_v53 }
 0x75a   : > { %v1805_v29 = vsel %vm763_vm7, %v3473_v30, %v1803_v21  ;;  %v1935_v51 = vmul.f32 %v3395_v50, %v1795_v18 }
 0x75b   : > { %v1922_v26 = vadd.f32 %v1918_v31, %v1906_v56  ;;  %v1810_v7 = vmul.f32 %v1805_v29, %v2734_v41  ;;  %v1807_v41 = vsel %vm763_vm7, %v1803_v21, %v3473_v30  ;;  %v1923_v17 = vadd.f32 %v1919_v54, %v1907_v12 }
 0x75c   : > { %v1811_v47 = vmul.f32 %v1807_v41, %v2737_v42 }
 0x75d   : > { %v1950_v9 = vmul.f32 %v3405_v58, %v1810_v7  ;;  %v1819_v13 = vpop.permute.xlu1 %1818  ;;  %v1938_v19 = vadd.f32 %v1934_v1, %v1922_v26  ;;  %v1939_v30 = vadd.f32 %v1935_v51, %v1923_v17 }
 0x75e   : > { %v1821_v2 = vsel %vm791_vm8, %v3483_v16, %v1819_v13  ;;  %v1823_v49 = vsel %vm791_vm8, %v1819_v13, %v3483_v16  ;;  %v1951_v27 = vmul.f32 %v3405_v58, %v1811_v47  ;;  %v1985_v16 = vadd.f32 %v1977_v61, %v3487_v43 }
 0x75f   : > { %v1826_v38 = vmul.f32 %v1821_v2, %v2756_v4  ;;  %v1954_v36 = vadd.f32 %v1950_v9, %v1938_v19  ;;  %v1827_v4 = vmul.f32 %v1823_v49, %v2759_v5  ;;  %v1988_v5 = vld [vmem:[%s3600_s16] sm:$0xff] }
 0x760   : > { %v1955_v10 = vadd.f32 %v1951_v27, %v1939_v30 }
 0x761   : > { %v1966_v22 = vmul.f32 %v3403_v63, %v1826_v38  ;;  %v1967_v24 = vmul.f32 %v3403_v63, %v1827_v4  ;;  %v1989_v63 = vld [vmem:[%s3600_s16 + $0x8] sm:$0xff] }
 0x763   : > { %v1970_v28 = vadd.f32 %v1966_v22, %v1954_v36  ;;  %v1971_v32 = vadd.f32 %v1967_v24, %v1955_v10 }
 0x76e   : > { %v1982_v48 = vpop.permute.xlu1 %1981 }
 0x76f   : > { %v1986_v42 = vadd.f32 %v1982_v48, %v1970_v28  ;;  %v1987_v14 = vadd.f32 %v1982_v48, %v1971_v32 }
 0x771   : > { %v2287_v44 = vpack.c.bf16 %v1987_v14, %v1985_v16  ;;  %v2289_v50 = vpack.c.bf16 %v1986_v42, %v1984_v23 }
 0x773   : > { %2288 = vmatprep.subr.bf16.mxu0 %v2287_v44 }
 0x774   : > { %2290 = vmatpush1.bf16.msra.mxu0 %v2289_v50 }
 0x777   : > { %2161 = vmatmul.mubr.msk.f32.vlgmr.msra.gmra.mrb[16].mxu0 %vm827_vm0, %v1988_v5 }
 0x778   : > { %2066 = vmatprep.mubr.f32.mxu0 %v3648_v6 }
 0x77b   : > { %2162 = vmatmul.mubr.msk.f32.gmra.mrb[18].mxu0 %vm827_vm0, %v1989_v63 }
 0x84a   : > { %v2062_v58 = vpop.f32.mrb[16].mxu0 }
 0x84b   : > { %2073 = vst [vmem:[%s548_s30] sm:$0xff] %v2062_v58  ;;  %v2064_v43 = vpop.f32.mrb[17].mxu0 }
 0x84c   : > { %2074 = vst [vmem:[%s548_s30 + $0x8] sm:$0xff] %v2064_v43 }
 0x84e   : > { %v2068_v25 = vpop.f32.mrb[18].mxu0 }
 0x84f   : > { %2075 = vst [vmem:[%s548_s30 + $0x10] sm:$0xff] %v2068_v25  ;;  %v2070_v45 = vpop.f32.mrb[19].mxu0 }
 0x850   : > { %2076 = vst [vmem:[%s548_s30 + $0x18] sm:$0xff] %v2070_v45 }
 0x851 PF: > { %s27_s24 = sadd.s32 1, %s2342_s24  }
 0x852   : > { %p24_p4 = scmp.ge.s32.totalorder %s27_s24, 4  }
 0x854   :  { %26 = sbr.rel (!%p24_p4) target bundleno = 7 (0x7), region = 126 }

</bundles_post_ra>
